<compile_context>
chip_gen: v5e
topology: v5e:2x2
jax: 0.10.0
libtpu: 0.0.40
codegen_flags: <defaults>
</compile_context>

<pallas_src>
import math

import jax
import jax.numpy as jnp
import numpy as np
from jax.experimental import pallas as pl
from jax.experimental.pallas import tpu as pltpu

IN_CHANNELS = 3           # forward() hard-codes x.view(-1, 3, winsize)
OUT_CHANNELS = 8
WINSIZE = 128
BATCH = 4
NFILTERS = (2, 2, OUT_CHANNELS)
BLOCKS = ((IN_CHANNELS, NFILTERS[0]),
          (NFILTERS[0], NFILTERS[1]),
          (NFILTERS[1], NFILTERS[2]))

# 'same' padding (left, right) exactly as PyTorch computes it for stride=1.
PAD = {1: (0, 0), 3: (1, 1), 5: (2, 2), 8: (3, 4)}


def _block_defs(cin, cout):
    # forward-order convs of one residual block: (cin, cout, kernel, relu_after_bn)
    return [
        (cin, cout, 1, False),   # shortcut: Conv1d(k=1) + BN
        (cin, cout, 8, True),    # conv_block k=8  (+ ReLU)
        (cout, cout, 5, True),   # conv_block k=5  (+ ReLU)
        (cout, cout, 3, False),  # conv_block k=3  (no ReLU)
    ]


CONV_DEFS = (
    _block_defs(*BLOCKS[0]) + _block_defs(*BLOCKS[1]) + _block_defs(*BLOCKS[2])
)

# Packed parameter slab geometry: 9 matmuls (per block: fused[k8 + shortcut], k5, k3).
N_MM = 9
R_MAX = 2 * OUT_CHANNELS                                           # 16 rows (block 3 fused)
C_MAX = max(OUT_CHANNELS * 5, IN_CHANNELS * 8, OUT_CHANNELS * 3)   # 40 contraction cols


# ----------------------------- Pallas kernel -----------------------------

def resnet_kernel(x_ref, w_ref, s_ref, o_ref):
    y = x_ref[0].astype(jnp.float32)                 # (C_in, lanes)
    lanes = y.shape[1]

    # Per-sample position along the window (batch is folded into lanes); masks
    # kill roll wrap-around across sample boundaries == 'same' zero padding.
    pos = jax.lax.broadcasted_iota(jnp.int32, (1, lanes), 1) % WINSIZE
    masks = {d: jnp.logical_and(pos + d >= 0, pos + d < WINSIZE)
             for d in range(-3, 5) if d != 0}        # hoisted out of tap loops

    def shifted(xc, d):
        # lane j of result = xc[:, j + d] inside its own sample, 0 outside.
        if d == 0:
            return xc
        r = pltpu.roll(xc, shift=(-d) % lanes, axis=1)   # lane-aligned XLU rotate
        return jnp.where(masks[d], r, 0.0)

    def im2col(xc, k, pad_l):
        return jnp.concatenate([shifted(xc, t - pad_l) for t in range(k)], axis=0)

    def mm(xk, idx, nrows, ncols):
        # bias + eval-mode BatchNorm already folded into w / s on the host.
        w = w_ref[idx][:nrows, :ncols]               # (nrows, ncols) bf16
        s = s_ref[idx][:nrows]                       # (nrows, 1) f32
        acc = jnp.dot(w, xk.astype(jnp.bfloat16),
                      preferred_element_type=jnp.float32)   # MXU, f32 accumulate
        return acc + s

    idx = 0
    for cin, cout in BLOCKS:
        # fused [conv k=8 ; shortcut k=1]: one matmul with 2*cout output rows
        xk = im2col(y, 8, PAD[8][0])                 # (cin*8, lanes)
        both = mm(xk, idx, 2 * cout, cin * 8)
        h = jnp.maximum(both[:cout], 0.0)            # conv k=8 + BN + ReLU
        sc = both[cout:]                             # shortcut conv k=1 + BN
        # conv k=5 + BN + ReLU
        h = jnp.maximum(mm(im2col(h, 5, PAD[5][0]), idx + 1, cout, cout * 5), 0.0)
        # conv k=3 + BN (no ReLU)
        h = mm(im2col(h, 3, PAD[3][0]), idx + 2, cout, cout * 3)
        y = jnp.maximum(h + sc, 0.0)                 # residual add + ReLU
        idx += 3
    o_ref[0] = y.astype(o_ref.dtype)


def resnet_forward(x_flat, w_pack, s_pack, n_split=None):
    x = x_flat.reshape(-1, IN_CHANNELS, WINSIZE)     # mirrors x.view(-1, 3, winsize)
    B = x.shape[0]
    if n_split is None:
        n_split = 2 if (B % 2 == 0 and B >= 2) else 1   # 2 steps -> both v7x TCs busy
    per = B // n_split
    lanes = per * WINSIZE

    # Fold batch into the lane axis: (n_split, C, per*WINSIZE), lane-dense output.
    x_fold = (x.reshape(n_split, per, IN_CHANNELS, WINSIZE)
               .transpose(0, 2, 1, 3)
               .reshape(n_split, IN_CHANNELS, lanes))

    out = pl.pallas_call(
        resnet_kernel,
        out_shape=jax.ShapeDtypeStruct((n_split, OUT_CHANNELS, lanes), jnp.float32),
        grid_spec=pltpu.PrefetchScalarGridSpec(
            num_scalar_prefetch=0,
            grid=(n_split,),
            in_specs=[
                pl.BlockSpec((1, IN_CHANNELS, lanes), lambda s: (s, 0, 0)),
                pl.BlockSpec(w_pack.shape, lambda s: (0, 0, 0)),   # packed weights, resident
                pl.BlockSpec(s_pack.shape, lambda s: (0, 0, 0)),   # packed shifts, resident
            ],
            out_specs=pl.BlockSpec((1, OUT_CHANNELS, lanes), lambda s: (s, 0, 0))),
        compiler_params=pltpu.CompilerParams(dimension_semantics=("parallel",)),
    )(x_fold, w_pack, s_pack)

    return (out.reshape(n_split, OUT_CHANNELS, per, WINSIZE)
               .transpose(0, 2, 1, 3)
               .reshape(B, OUT_CHANNELS, WINSIZE))


# -------------------- deterministic parameter construction --------------------

def init_conv_bn(key, cin, cout, k):
    ks = jax.random.split(key, 6)
    bound = 1.0 / math.sqrt(cin * k)
    w = jax.random.uniform(ks[0], (cout, cin, k), jnp.float32, -bound, bound)
    b = jax.random.uniform(ks[1], (cout,), jnp.float32, -bound, bound)
    gamma = jax.random.uniform(ks[2], (cout,), jnp.float32, 0.5, 1.5)
    beta = jax.random.uniform(ks[3], (cout,), jnp.float32, -0.5, 0.5)
    rmean = jax.random.uniform(ks[4], (cout,), jnp.float32, -0.5, 0.5)
    rvar = jax.random.uniform(ks[5], (cout,), jnp.float32, 0.5, 1.5)
    eps = 1e-5
    scale = gamma / jnp.sqrt(rvar + eps)              # eval-mode BatchNorm
    shift = beta - rmean * scale
    # fold conv bias + BN affine into the conv weights (host side)
    wf = w * scale[:, None, None]                     # (cout, cin, k)
    sf = scale * b + shift                            # (cout,)
    # wm[co, t*cin + ci] == wf[co, ci, t]  (matches im2col row ordering in kernel)
    wm = jnp.transpose(wf, (0, 2, 1)).reshape(cout, k * cin)
    return dict(w=w, b=b, scale=scale, shift=shift,
                wm_folded=wm, shift_folded=sf, k=k, cin=cin, cout=cout)


def pack_params(param_dicts):
    """param_dicts order per block: [shortcut(k=1), k=8, k=5, k=3]."""
    Wp = np.zeros((N_MM, R_MAX, C_MAX), np.float32)
    Sp = np.zeros((N_MM, R_MAX, 1), np.float32)
    idx = 0
    for blk, (cin, cout) in enumerate(BLOCKS):
        p_sc, p8, p5, p3 = param_dicts[4 * blk: 4 * blk + 4]
        # fused [k=8 conv ; k=1 shortcut]: shortcut weights go in the tap-offset-0
        # columns of the k=8 im2col, i.e. tap t = pad_left = 3 -> cols [3*cin, 4*cin).
        Wp[idx, :cout, :cin * 8] = np.asarray(p8['wm_folded'])
        Wp[idx, cout:2 * cout, 3 * cin:4 * cin] = np.asarray(p_sc['wm_folded'])
        Sp[idx, :cout, 0] = np.asarray(p8['shift_folded'])
        Sp[idx, cout:2 * cout, 0] = np.asarray(p_sc['shift_folded'])
        Wp[idx + 1, :cout, :cout * 5] = np.asarray(p5['wm_folded'])
        Sp[idx + 1, :cout, 0] = np.asarray(p5['shift_folded'])
        Wp[idx + 2, :cout, :cout * 3] = np.asarray(p3['wm_folded'])
        Sp[idx + 2, :cout, 0] = np.asarray(p3['shift_folded'])
        idx += 3
    return jnp.asarray(Wp, jnp.bfloat16), jnp.asarray(Sp, jnp.float32)


# ----------------------------- pure-JAX reference -----------------------------

def ref_forward(x_flat, param_dicts):
    """Reference with the same bf16-operand / f32-accumulate matmul precision
    as the kernel's MXU (all elementwise / residual math stays f32)."""
    x = x_flat.reshape(-1, IN_CHANNELS, WINSIZE)

    def cb(inp, p, relu):
        k = p['k']
        wf = (p['w'] * p['scale'][:, None, None]).astype(jnp.bfloat16)
        out = jax.lax.conv_general_dilated(
            inp.astype(jnp.bfloat16), wf, window_strides=(1,), padding=[PAD[k]],
            dimension_numbers=('NCH', 'OIH', 'NCH'),
            preferred_element_type=jnp.float32)
        out = out + (p['scale'] * p['b'] + p['shift'])[None, :, None]
        if relu:
            out = jnp.maximum(out, 0.0)
        return out

    y = x
    for blk in range(3):
        p_sc, p8, p5, p3 = param_dicts[4 * blk: 4 * blk + 4]
        sc = cb(y, p_sc, relu=False)
        h = cb(y, p8, relu=True)
        h = cb(h, p5, relu=True)
        h = cb(h, p3, relu=False)
        y = jnp.maximum(h + sc, 0.0)
    return y


if __name__ == "__main__":
    key = jax.random.PRNGKey(0)
    kx, kp = jax.random.split(key)
    x_flat = jax.random.normal(kx, (BATCH, IN_CHANNELS * WINSIZE), jnp.float32)

    param_dicts = []
    pkeys = jax.random.split(kp, len(CONV_DEFS))
    for (cin, cout, k, _), pk in zip(CONV_DEFS, pkeys):
        param_dicts.append(init_conv_bn(pk, cin, cout, k))
    w_pack, s_pack = pack_params(param_dicts)

    out = resnet_forward(x_flat, w_pack, s_pack)
    out = jax.block_until_ready(out)

    ref = ref_forward(x_flat, param_dicts)
    assert out.shape == (BATCH, OUT_CHANNELS, WINSIZE)
    np.testing.assert_allclose(np.asarray(out), np.asarray(ref), rtol=2e-3, atol=2e-3)
    print("KERNEL_OK")
</pallas_src>

<mosaic_0001>
module attributes {stable_mosaic.version = 11 : i64} {
  func.func @resnet_kernel(%arg0: i32, %arg1: memref<1x3x256xf32, #tpu.memory_space<vmem>>, %arg2: memref<9x16x40xbf16, #tpu.memory_space<vmem>>, %arg3: memref<9x16x1xf32, #tpu.memory_space<vmem>>, %arg4: memref<1x8x256xf32, #tpu.memory_space<vmem>>) attributes {dimension_semantics = [#tpu.dimension_semantics<parallel>], iteration_bounds = array<i64: 2>, scalar_prefetch = 0 : i64, scratch_operands = 0 : i64, tpu.core_type = #tpu.core_type<tc>, window_params = [{transform_indices = @transform_0, window_bounds = array<i64: 1, 3, 256>}, {pipeline_mode = #tpu.pipeline_mode<synchronous>, transform_indices = @transform_1, window_bounds = array<i64: 9, 16, 40>}, {pipeline_mode = #tpu.pipeline_mode<synchronous>, transform_indices = @transform_2, window_bounds = array<i64: 9, 16, 1>}, {transform_indices = @transform_3, window_bounds = array<i64: 1, 8, 256>}]} {
    %c0 = arith.constant 0 : index
    %c0_0 = arith.constant 0 : index
    %c0_1 = arith.constant 0 : index
    %0 = vector.load %arg1[%c0, %c0_0, %c0_1] : memref<1x3x256xf32, #tpu.memory_space<vmem>>, vector<1x3x256xf32>
    %1 = vector.shape_cast %0 : vector<1x3x256xf32> to vector<3x256xf32>
    %2 = tpu.iota {dimensions = array<i32: 1>} : vector<1x256xi32>
    %c128_i32 = arith.constant 128 : i32
    %c0_i32 = arith.constant 0 : i32
    %3 = arith.cmpi eq, %c128_i32, %c0_i32 : i32
    %c1_i32 = arith.constant 1 : i32
    %4 = arith.select %3, %c1_i32, %c128_i32 : i32
    %5 = vector.broadcast %4 : i32 to vector<1x256xi32>
    %6 = arith.remsi %2, %5 : vector<1x256xi32>
    %c0_i32_2 = arith.constant 0 : i32
    %7 = vector.broadcast %c0_i32_2 : i32 to vector<1x256xi32>
    %8 = arith.cmpi ne, %6, %7 : vector<1x256xi32>
    %c0_i32_3 = arith.constant 0 : i32
    %9 = vector.broadcast %c0_i32_3 : i32 to vector<1x256xi32>
    %10 = arith.cmpi slt, %6, %9 : vector<1x256xi32>
    %c0_i32_4 = arith.constant 0 : i32
    %11 = arith.cmpi slt, %4, %c0_i32_4 : i32
    %12 = vector.broadcast %11 : i1 to vector<1x256xi1>
    %13 = vector.broadcast %12 : vector<1x256xi1> to vector<1x256xi1>
    %14 = arith.xori %10, %13 : vector<1x256xi1>
    %15 = arith.andi %14, %8 : vector<1x256xi1>
    %16 = vector.broadcast %4 : i32 to vector<1x256xi32>
    %17 = arith.addi %6, %16 : vector<1x256xi32>
    %18 = arith.select %15, %17, %6 : vector<1x256xi1>, vector<1x256xi32>
    %c-3_i32 = arith.constant -3 : i32
    %19 = vector.broadcast %c-3_i32 : i32 to vector<1x256xi32>
    %20 = arith.addi %18, %19 : vector<1x256xi32>
    %c0_i32_5 = arith.constant 0 : i32
    %21 = vector.broadcast %c0_i32_5 : i32 to vector<1x256xi32>
    %22 = arith.cmpi sge, %20, %21 : vector<1x256xi32>
    %c-3_i32_6 = arith.constant -3 : i32
    %23 = vector.broadcast %c-3_i32_6 : i32 to vector<1x256xi32>
    %24 = arith.addi %18, %23 : vector<1x256xi32>
    %c128_i32_7 = arith.constant 128 : i32
    %25 = vector.broadcast %c128_i32_7 : i32 to vector<1x256xi32>
    %26 = arith.cmpi slt, %24, %25 : vector<1x256xi32>
    %27 = arith.andi %22, %26 : vector<1x256xi1>
    %c-2_i32 = arith.constant -2 : i32
    %28 = vector.broadcast %c-2_i32 : i32 to vector<1x256xi32>
    %29 = arith.addi %18, %28 : vector<1x256xi32>
    %c0_i32_8 = arith.constant 0 : i32
    %30 = vector.broadcast %c0_i32_8 : i32 to vector<1x256xi32>
    %31 = arith.cmpi sge, %29, %30 : vector<1x256xi32>
    %c-2_i32_9 = arith.constant -2 : i32
    %32 = vector.broadcast %c-2_i32_9 : i32 to vector<1x256xi32>
    %33 = arith.addi %18, %32 : vector<1x256xi32>
    %c128_i32_10 = arith.constant 128 : i32
    %34 = vector.broadcast %c128_i32_10 : i32 to vector<1x256xi32>
    %35 = arith.cmpi slt, %33, %34 : vector<1x256xi32>
    %36 = arith.andi %31, %35 : vector<1x256xi1>
    %c-1_i32 = arith.constant -1 : i32
    %37 = vector.broadcast %c-1_i32 : i32 to vector<1x256xi32>
    %38 = arith.addi %18, %37 : vector<1x256xi32>
    %c0_i32_11 = arith.constant 0 : i32
    %39 = vector.broadcast %c0_i32_11 : i32 to vector<1x256xi32>
    %40 = arith.cmpi sge, %38, %39 : vector<1x256xi32>
    %c-1_i32_12 = arith.constant -1 : i32
    %41 = vector.broadcast %c-1_i32_12 : i32 to vector<1x256xi32>
    %42 = arith.addi %18, %41 : vector<1x256xi32>
    %c128_i32_13 = arith.constant 128 : i32
    %43 = vector.broadcast %c128_i32_13 : i32 to vector<1x256xi32>
    %44 = arith.cmpi slt, %42, %43 : vector<1x256xi32>
    %45 = arith.andi %40, %44 : vector<1x256xi1>
    %c1_i32_14 = arith.constant 1 : i32
    %46 = vector.broadcast %c1_i32_14 : i32 to vector<1x256xi32>
    %47 = arith.addi %18, %46 : vector<1x256xi32>
    %c0_i32_15 = arith.constant 0 : i32
    %48 = vector.broadcast %c0_i32_15 : i32 to vector<1x256xi32>
    %49 = arith.cmpi sge, %47, %48 : vector<1x256xi32>
    %c1_i32_16 = arith.constant 1 : i32
    %50 = vector.broadcast %c1_i32_16 : i32 to vector<1x256xi32>
    %51 = arith.addi %18, %50 : vector<1x256xi32>
    %c128_i32_17 = arith.constant 128 : i32
    %52 = vector.broadcast %c128_i32_17 : i32 to vector<1x256xi32>
    %53 = arith.cmpi slt, %51, %52 : vector<1x256xi32>
    %54 = arith.andi %49, %53 : vector<1x256xi1>
    %c2_i32 = arith.constant 2 : i32
    %55 = vector.broadcast %c2_i32 : i32 to vector<1x256xi32>
    %56 = arith.addi %18, %55 : vector<1x256xi32>
    %c0_i32_18 = arith.constant 0 : i32
    %57 = vector.broadcast %c0_i32_18 : i32 to vector<1x256xi32>
    %58 = arith.cmpi sge, %56, %57 : vector<1x256xi32>
    %c2_i32_19 = arith.constant 2 : i32
    %59 = vector.broadcast %c2_i32_19 : i32 to vector<1x256xi32>
    %60 = arith.addi %18, %59 : vector<1x256xi32>
    %c128_i32_20 = arith.constant 128 : i32
    %61 = vector.broadcast %c128_i32_20 : i32 to vector<1x256xi32>
    %62 = arith.cmpi slt, %60, %61 : vector<1x256xi32>
    %63 = arith.andi %58, %62 : vector<1x256xi1>
    %c3_i32 = arith.constant 3 : i32
    %64 = vector.broadcast %c3_i32 : i32 to vector<1x256xi32>
    %65 = arith.addi %18, %64 : vector<1x256xi32>
    %c0_i32_21 = arith.constant 0 : i32
    %66 = vector.broadcast %c0_i32_21 : i32 to vector<1x256xi32>
    %67 = arith.cmpi sge, %65, %66 : vector<1x256xi32>
    %c3_i32_22 = arith.constant 3 : i32
    %68 = vector.broadcast %c3_i32_22 : i32 to vector<1x256xi32>
    %69 = arith.addi %18, %68 : vector<1x256xi32>
    %c128_i32_23 = arith.constant 128 : i32
    %70 = vector.broadcast %c128_i32_23 : i32 to vector<1x256xi32>
    %71 = arith.cmpi slt, %69, %70 : vector<1x256xi32>
    %72 = arith.andi %67, %71 : vector<1x256xi1>
    %c4_i32 = arith.constant 4 : i32
    %73 = vector.broadcast %c4_i32 : i32 to vector<1x256xi32>
    %74 = arith.addi %18, %73 : vector<1x256xi32>
    %c0_i32_24 = arith.constant 0 : i32
    %75 = vector.broadcast %c0_i32_24 : i32 to vector<1x256xi32>
    %76 = arith.cmpi sge, %74, %75 : vector<1x256xi32>
    %c4_i32_25 = arith.constant 4 : i32
    %77 = vector.broadcast %c4_i32_25 : i32 to vector<1x256xi32>
    %78 = arith.addi %18, %77 : vector<1x256xi32>
    %c128_i32_26 = arith.constant 128 : i32
    %79 = vector.broadcast %c128_i32_26 : i32 to vector<1x256xi32>
    %80 = arith.cmpi slt, %78, %79 : vector<1x256xi32>
    %81 = arith.andi %76, %80 : vector<1x256xi1>
    %c3_i32_27 = arith.constant 3 : i32
    %82 = tpu.dynamic_rotate %1 by %c3_i32_27 dim 1 : vector<3x256xf32>, i32 -> vector<3x256xf32>
    %cst = arith.constant 0.000000e+00 : f32
    %83 = vector.shape_cast %27 : vector<1x256xi1> to vector<1x256xi1>
    %84 = vector.broadcast %83 : vector<1x256xi1> to vector<3x256xi1>
    %85 = vector.broadcast %cst : f32 to vector<3x256xf32>
    %86 = arith.select %84, %82, %85 : vector<3x256xi1>, vector<3x256xf32>
    %c2_i32_28 = arith.constant 2 : i32
    %87 = tpu.dynamic_rotate %1 by %c2_i32_28 dim 1 : vector<3x256xf32>, i32 -> vector<3x256xf32>
    %cst_29 = arith.constant 0.000000e+00 : f32
    %88 = vector.shape_cast %36 : vector<1x256xi1> to vector<1x256xi1>
    %89 = vector.broadcast %88 : vector<1x256xi1> to vector<3x256xi1>
    %90 = vector.broadcast %cst_29 : f32 to vector<3x256xf32>
    %91 = arith.select %89, %87, %90 : vector<3x256xi1>, vector<3x256xf32>
    %c1_i32_30 = arith.constant 1 : i32
    %92 = tpu.dynamic_rotate %1 by %c1_i32_30 dim 1 : vector<3x256xf32>, i32 -> vector<3x256xf32>
    %cst_31 = arith.constant 0.000000e+00 : f32
    %93 = vector.shape_cast %45 : vector<1x256xi1> to vector<1x256xi1>
    %94 = vector.broadcast %93 : vector<1x256xi1> to vector<3x256xi1>
    %95 = vector.broadcast %cst_31 : f32 to vector<3x256xf32>
    %96 = arith.select %94, %92, %95 : vector<3x256xi1>, vector<3x256xf32>
    %c255_i32 = arith.constant 255 : i32
    %97 = tpu.dynamic_rotate %1 by %c255_i32 dim 1 : vector<3x256xf32>, i32 -> vector<3x256xf32>
    %cst_32 = arith.constant 0.000000e+00 : f32
    %98 = vector.shape_cast %54 : vector<1x256xi1> to vector<1x256xi1>
    %99 = vector.broadcast %98 : vector<1x256xi1> to vector<3x256xi1>
    %100 = vector.broadcast %cst_32 : f32 to vector<3x256xf32>
    %101 = arith.select %99, %97, %100 : vector<3x256xi1>, vector<3x256xf32>
    %c254_i32 = arith.constant 254 : i32
    %102 = tpu.dynamic_rotate %1 by %c254_i32 dim 1 : vector<3x256xf32>, i32 -> vector<3x256xf32>
    %cst_33 = arith.constant 0.000000e+00 : f32
    %103 = vector.shape_cast %63 : vector<1x256xi1> to vector<1x256xi1>
    %104 = vector.broadcast %103 : vector<1x256xi1> to vector<3x256xi1>
    %105 = vector.broadcast %cst_33 : f32 to vector<3x256xf32>
    %106 = arith.select %104, %102, %105 : vector<3x256xi1>, vector<3x256xf32>
    %c253_i32 = arith.constant 253 : i32
    %107 = tpu.dynamic_rotate %1 by %c253_i32 dim 1 : vector<3x256xf32>, i32 -> vector<3x256xf32>
    %cst_34 = arith.constant 0.000000e+00 : f32
    %108 = vector.shape_cast %72 : vector<1x256xi1> to vector<1x256xi1>
    %109 = vector.broadcast %108 : vector<1x256xi1> to vector<3x256xi1>
    %110 = vector.broadcast %cst_34 : f32 to vector<3x256xf32>
    %111 = arith.select %109, %107, %110 : vector<3x256xi1>, vector<3x256xf32>
    %c252_i32 = arith.constant 252 : i32
    %112 = tpu.dynamic_rotate %1 by %c252_i32 dim 1 : vector<3x256xf32>, i32 -> vector<3x256xf32>
    %cst_35 = arith.constant 0.000000e+00 : f32
    %113 = vector.shape_cast %81 : vector<1x256xi1> to vector<1x256xi1>
    %114 = vector.broadcast %113 : vector<1x256xi1> to vector<3x256xi1>
    %115 = vector.broadcast %cst_35 : f32 to vector<3x256xf32>
    %116 = arith.select %114, %112, %115 : vector<3x256xi1>, vector<3x256xf32>
    %117 = tpu.concatenate %86, %91, %96, %1, %101, %106, %111, %116 in 0 : vector<3x256xf32>, vector<3x256xf32>, vector<3x256xf32>, vector<3x256xf32>, vector<3x256xf32>, vector<3x256xf32>, vector<3x256xf32>, vector<3x256xf32> -> vector<24x256xf32>
    %c0_36 = arith.constant 0 : index
    %c0_37 = arith.constant 0 : index
    %c0_38 = arith.constant 0 : index
    %118 = vector.load %arg2[%c0_36, %c0_37, %c0_38] : memref<9x16x40xbf16, #tpu.memory_space<vmem>>, vector<1x16x40xbf16>
    %119 = vector.shape_cast %118 : vector<1x16x40xbf16> to vector<16x40xbf16>
    %120 = vector.extract_strided_slice %119 {offsets = [0, 0], sizes = [4, 24], strides = [1, 1]} : vector<16x40xbf16> to vector<4x24xbf16>
    %c0_39 = arith.constant 0 : index
    %c0_40 = arith.constant 0 : index
    %c0_41 = arith.constant 0 : index
    %121 = vector.load %arg3[%c0_39, %c0_40, %c0_41] : memref<9x16x1xf32, #tpu.memory_space<vmem>>, vector<1x16x1xf32>
    %122 = vector.shape_cast %121 : vector<1x16x1xf32> to vector<16x1xf32>
    %123 = vector.extract_strided_slice %122 {offsets = [0, 0], sizes = [4, 1], strides = [1, 1]} : vector<16x1xf32> to vector<4x1xf32>
    %124 = arith.truncf %117 : vector<24x256xf32> to vector<24x256xbf16>
    %cst_42 = arith.constant dense<0.000000e+00> : vector<4x256xf32>
    %125 = tpu.matmul %120, %124, %cst_42 {dimension_numbers = #tpu.dot_dimension_numbers<[1], [0], [0], [1], [0, 0, 1, 1], [], []>} : vector<4x24xbf16>, vector<24x256xbf16>, vector<4x256xf32> -> vector<4x256xf32>
    %126 = vector.broadcast %123 : vector<4x1xf32> to vector<4x256xf32>
    %127 = arith.addf %125, %126 : vector<4x256xf32>
    %128 = vector.extract_strided_slice %127 {offsets = [0, 0], sizes = [2, 256], strides = [1, 1]} : vector<4x256xf32> to vector<2x256xf32>
    %cst_43 = arith.constant 0.000000e+00 : f32
    %129 = vector.broadcast %cst_43 : f32 to vector<2x256xf32>
    %130 = arith.maximumf %128, %129 : vector<2x256xf32>
    %131 = vector.extract_strided_slice %127 {offsets = [2, 0], sizes = [2, 256], strides = [1, 1]} : vector<4x256xf32> to vector<2x256xf32>
    %c2_i32_44 = arith.constant 2 : i32
    %132 = tpu.dynamic_rotate %130 by %c2_i32_44 dim 1 : vector<2x256xf32>, i32 -> vector<2x256xf32>
    %cst_45 = arith.constant 0.000000e+00 : f32
    %133 = vector.shape_cast %36 : vector<1x256xi1> to vector<1x256xi1>
    %134 = vector.broadcast %133 : vector<1x256xi1> to vector<2x256xi1>
    %135 = vector.broadcast %cst_45 : f32 to vector<2x256xf32>
    %136 = arith.select %134, %132, %135 : vector<2x256xi1>, vector<2x256xf32>
    %c1_i32_46 = arith.constant 1 : i32
    %137 = tpu.dynamic_rotate %130 by %c1_i32_46 dim 1 : vector<2x256xf32>, i32 -> vector<2x256xf32>
    %cst_47 = arith.constant 0.000000e+00 : f32
    %138 = vector.shape_cast %45 : vector<1x256xi1> to vector<1x256xi1>
    %139 = vector.broadcast %138 : vector<1x256xi1> to vector<2x256xi1>
    %140 = vector.broadcast %cst_47 : f32 to vector<2x256xf32>
    %141 = arith.select %139, %137, %140 : vector<2x256xi1>, vector<2x256xf32>
    %c255_i32_48 = arith.constant 255 : i32
    %142 = tpu.dynamic_rotate %130 by %c255_i32_48 dim 1 : vector<2x256xf32>, i32 -> vector<2x256xf32>
    %cst_49 = arith.constant 0.000000e+00 : f32
    %143 = vector.shape_cast %54 : vector<1x256xi1> to vector<1x256xi1>
    %144 = vector.broadcast %143 : vector<1x256xi1> to vector<2x256xi1>
    %145 = vector.broadcast %cst_49 : f32 to vector<2x256xf32>
    %146 = arith.select %144, %142, %145 : vector<2x256xi1>, vector<2x256xf32>
    %c254_i32_50 = arith.constant 254 : i32
    %147 = tpu.dynamic_rotate %130 by %c254_i32_50 dim 1 : vector<2x256xf32>, i32 -> vector<2x256xf32>
    %cst_51 = arith.constant 0.000000e+00 : f32
    %148 = vector.shape_cast %63 : vector<1x256xi1> to vector<1x256xi1>
    %149 = vector.broadcast %148 : vector<1x256xi1> to vector<2x256xi1>
    %150 = vector.broadcast %cst_51 : f32 to vector<2x256xf32>
    %151 = arith.select %149, %147, %150 : vector<2x256xi1>, vector<2x256xf32>
    %152 = tpu.concatenate %136, %141, %130, %146, %151 in 0 : vector<2x256xf32>, vector<2x256xf32>, vector<2x256xf32>, vector<2x256xf32>, vector<2x256xf32> -> vector<10x256xf32>
    %c1 = arith.constant 1 : index
    %c0_52 = arith.constant 0 : index
    %c0_53 = arith.constant 0 : index
    %153 = vector.load %arg2[%c1, %c0_52, %c0_53] : memref<9x16x40xbf16, #tpu.memory_space<vmem>>, vector<1x16x40xbf16>
    %154 = vector.shape_cast %153 : vector<1x16x40xbf16> to vector<16x40xbf16>
    %155 = vector.extract_strided_slice %154 {offsets = [0, 0], sizes = [2, 10], strides = [1, 1]} : vector<16x40xbf16> to vector<2x10xbf16>
    %c1_54 = arith.constant 1 : index
    %c0_55 = arith.constant 0 : index
    %c0_56 = arith.constant 0 : index
    %156 = vector.load %arg3[%c1_54, %c0_55, %c0_56] : memref<9x16x1xf32, #tpu.memory_space<vmem>>, vector<1x16x1xf32>
    %157 = vector.shape_cast %156 : vector<1x16x1xf32> to vector<16x1xf32>
    %158 = vector.extract_strided_slice %157 {offsets = [0, 0], sizes = [2, 1], strides = [1, 1]} : vector<16x1xf32> to vector<2x1xf32>
    %159 = arith.truncf %152 : vector<10x256xf32> to vector<10x256xbf16>
    %cst_57 = arith.constant dense<0.000000e+00> : vector<2x256xf32>
    %160 = tpu.matmul %155, %159, %cst_57 {dimension_numbers = #tpu.dot_dimension_numbers<[1], [0], [0], [1], [0, 0, 1, 1], [], []>} : vector<2x10xbf16>, vector<10x256xbf16>, vector<2x256xf32> -> vector<2x256xf32>
    %161 = vector.broadcast %158 : vector<2x1xf32> to vector<2x256xf32>
    %162 = arith.addf %160, %161 : vector<2x256xf32>
    %cst_58 = arith.constant 0.000000e+00 : f32
    %163 = vector.broadcast %cst_58 : f32 to vector<2x256xf32>
    %164 = arith.maximumf %162, %163 : vector<2x256xf32>
    %c1_i32_59 = arith.constant 1 : i32
    %165 = tpu.dynamic_rotate %164 by %c1_i32_59 dim 1 : vector<2x256xf32>, i32 -> vector<2x256xf32>
    %cst_60 = arith.constant 0.000000e+00 : f32
    %166 = vector.shape_cast %45 : vector<1x256xi1> to vector<1x256xi1>
    %167 = vector.broadcast %166 : vector<1x256xi1> to vector<2x256xi1>
    %168 = vector.broadcast %cst_60 : f32 to vector<2x256xf32>
    %169 = arith.select %167, %165, %168 : vector<2x256xi1>, vector<2x256xf32>
    %c255_i32_61 = arith.constant 255 : i32
    %170 = tpu.dynamic_rotate %164 by %c255_i32_61 dim 1 : vector<2x256xf32>, i32 -> vector<2x256xf32>
    %cst_62 = arith.constant 0.000000e+00 : f32
    %171 = vector.shape_cast %54 : vector<1x256xi1> to vector<1x256xi1>
    %172 = vector.broadcast %171 : vector<1x256xi1> to vector<2x256xi1>
    %173 = vector.broadcast %cst_62 : f32 to vector<2x256xf32>
    %174 = arith.select %172, %170, %173 : vector<2x256xi1>, vector<2x256xf32>
    %175 = tpu.concatenate %169, %164, %174 in 0 : vector<2x256xf32>, vector<2x256xf32>, vector<2x256xf32> -> vector<6x256xf32>
    %c2 = arith.constant 2 : index
    %c0_63 = arith.constant 0 : index
    %c0_64 = arith.constant 0 : index
    %176 = vector.load %arg2[%c2, %c0_63, %c0_64] : memref<9x16x40xbf16, #tpu.memory_space<vmem>>, vector<1x16x40xbf16>
    %177 = vector.shape_cast %176 : vector<1x16x40xbf16> to vector<16x40xbf16>
    %178 = vector.extract_strided_slice %177 {offsets = [0, 0], sizes = [2, 6], strides = [1, 1]} : vector<16x40xbf16> to vector<2x6xbf16>
    %c2_65 = arith.constant 2 : index
    %c0_66 = arith.constant 0 : index
    %c0_67 = arith.constant 0 : index
    %179 = vector.load %arg3[%c2_65, %c0_66, %c0_67] : memref<9x16x1xf32, #tpu.memory_space<vmem>>, vector<1x16x1xf32>
    %180 = vector.shape_cast %179 : vector<1x16x1xf32> to vector<16x1xf32>
    %181 = vector.extract_strided_slice %180 {offsets = [0, 0], sizes = [2, 1], strides = [1, 1]} : vector<16x1xf32> to vector<2x1xf32>
    %182 = arith.truncf %175 : vector<6x256xf32> to vector<6x256xbf16>
    %cst_68 = arith.constant dense<0.000000e+00> : vector<2x256xf32>
    %183 = tpu.matmul %178, %182, %cst_68 {dimension_numbers = #tpu.dot_dimension_numbers<[1], [0], [0], [1], [0, 0, 1, 1], [], []>} : vector<2x6xbf16>, vector<6x256xbf16>, vector<2x256xf32> -> vector<2x256xf32>
    %184 = vector.broadcast %181 : vector<2x1xf32> to vector<2x256xf32>
    %185 = arith.addf %183, %184 : vector<2x256xf32>
    %186 = arith.addf %185, %131 : vector<2x256xf32>
    %cst_69 = arith.constant 0.000000e+00 : f32
    %187 = vector.broadcast %cst_69 : f32 to vector<2x256xf32>
    %188 = arith.maximumf %186, %187 : vector<2x256xf32>
    %c3_i32_70 = arith.constant 3 : i32
    %189 = tpu.dynamic_rotate %188 by %c3_i32_70 dim 1 : vector<2x256xf32>, i32 -> vector<2x256xf32>
    %cst_71 = arith.constant 0.000000e+00 : f32
    %190 = vector.shape_cast %27 : vector<1x256xi1> to vector<1x256xi1>
    %191 = vector.broadcast %190 : vector<1x256xi1> to vector<2x256xi1>
    %192 = vector.broadcast %cst_71 : f32 to vector<2x256xf32>
    %193 = arith.select %191, %189, %192 : vector<2x256xi1>, vector<2x256xf32>
    %c2_i32_72 = arith.constant 2 : i32
    %194 = tpu.dynamic_rotate %188 by %c2_i32_72 dim 1 : vector<2x256xf32>, i32 -> vector<2x256xf32>
    %cst_73 = arith.constant 0.000000e+00 : f32
    %195 = vector.shape_cast %36 : vector<1x256xi1> to vector<1x256xi1>
    %196 = vector.broadcast %195 : vector<1x256xi1> to vector<2x256xi1>
    %197 = vector.broadcast %cst_73 : f32 to vector<2x256xf32>
    %198 = arith.select %196, %194, %197 : vector<2x256xi1>, vector<2x256xf32>
    %c1_i32_74 = arith.constant 1 : i32
    %199 = tpu.dynamic_rotate %188 by %c1_i32_74 dim 1 : vector<2x256xf32>, i32 -> vector<2x256xf32>
    %cst_75 = arith.constant 0.000000e+00 : f32
    %200 = vector.shape_cast %45 : vector<1x256xi1> to vector<1x256xi1>
    %201 = vector.broadcast %200 : vector<1x256xi1> to vector<2x256xi1>
    %202 = vector.broadcast %cst_75 : f32 to vector<2x256xf32>
    %203 = arith.select %201, %199, %202 : vector<2x256xi1>, vector<2x256xf32>
    %c255_i32_76 = arith.constant 255 : i32
    %204 = tpu.dynamic_rotate %188 by %c255_i32_76 dim 1 : vector<2x256xf32>, i32 -> vector<2x256xf32>
    %cst_77 = arith.constant 0.000000e+00 : f32
    %205 = vector.shape_cast %54 : vector<1x256xi1> to vector<1x256xi1>
    %206 = vector.broadcast %205 : vector<1x256xi1> to vector<2x256xi1>
    %207 = vector.broadcast %cst_77 : f32 to vector<2x256xf32>
    %208 = arith.select %206, %204, %207 : vector<2x256xi1>, vector<2x256xf32>
    %c254_i32_78 = arith.constant 254 : i32
    %209 = tpu.dynamic_rotate %188 by %c254_i32_78 dim 1 : vector<2x256xf32>, i32 -> vector<2x256xf32>
    %cst_79 = arith.constant 0.000000e+00 : f32
    %210 = vector.shape_cast %63 : vector<1x256xi1> to vector<1x256xi1>
    %211 = vector.broadcast %210 : vector<1x256xi1> to vector<2x256xi1>
    %212 = vector.broadcast %cst_79 : f32 to vector<2x256xf32>
    %213 = arith.select %211, %209, %212 : vector<2x256xi1>, vector<2x256xf32>
    %c253_i32_80 = arith.constant 253 : i32
    %214 = tpu.dynamic_rotate %188 by %c253_i32_80 dim 1 : vector<2x256xf32>, i32 -> vector<2x256xf32>
    %cst_81 = arith.constant 0.000000e+00 : f32
    %215 = vector.shape_cast %72 : vector<1x256xi1> to vector<1x256xi1>
    %216 = vector.broadcast %215 : vector<1x256xi1> to vector<2x256xi1>
    %217 = vector.broadcast %cst_81 : f32 to vector<2x256xf32>
    %218 = arith.select %216, %214, %217 : vector<2x256xi1>, vector<2x256xf32>
    %c252_i32_82 = arith.constant 252 : i32
    %219 = tpu.dynamic_rotate %188 by %c252_i32_82 dim 1 : vector<2x256xf32>, i32 -> vector<2x256xf32>
    %cst_83 = arith.constant 0.000000e+00 : f32
    %220 = vector.shape_cast %81 : vector<1x256xi1> to vector<1x256xi1>
    %221 = vector.broadcast %220 : vector<1x256xi1> to vector<2x256xi1>
    %222 = vector.broadcast %cst_83 : f32 to vector<2x256xf32>
    %223 = arith.select %221, %219, %222 : vector<2x256xi1>, vector<2x256xf32>
    %224 = tpu.concatenate %193, %198, %203, %188, %208, %213, %218, %223 in 0 : vector<2x256xf32>, vector<2x256xf32>, vector<2x256xf32>, vector<2x256xf32>, vector<2x256xf32>, vector<2x256xf32>, vector<2x256xf32>, vector<2x256xf32> -> vector<16x256xf32>
    %c3 = arith.constant 3 : index
    %c0_84 = arith.constant 0 : index
    %c0_85 = arith.constant 0 : index
    %225 = vector.load %arg2[%c3, %c0_84, %c0_85] : memref<9x16x40xbf16, #tpu.memory_space<vmem>>, vector<1x16x40xbf16>
    %226 = vector.shape_cast %225 : vector<1x16x40xbf16> to vector<16x40xbf16>
    %227 = vector.extract_strided_slice %226 {offsets = [0, 0], sizes = [4, 16], strides = [1, 1]} : vector<16x40xbf16> to vector<4x16xbf16>
    %c3_86 = arith.constant 3 : index
    %c0_87 = arith.constant 0 : index
    %c0_88 = arith.constant 0 : index
    %228 = vector.load %arg3[%c3_86, %c0_87, %c0_88] : memref<9x16x1xf32, #tpu.memory_space<vmem>>, vector<1x16x1xf32>
    %229 = vector.shape_cast %228 : vector<1x16x1xf32> to vector<16x1xf32>
    %230 = vector.extract_strided_slice %229 {offsets = [0, 0], sizes = [4, 1], strides = [1, 1]} : vector<16x1xf32> to vector<4x1xf32>
    %231 = arith.truncf %224 : vector<16x256xf32> to vector<16x256xbf16>
    %cst_89 = arith.constant dense<0.000000e+00> : vector<4x256xf32>
    %232 = tpu.matmul %227, %231, %cst_89 {dimension_numbers = #tpu.dot_dimension_numbers<[1], [0], [0], [1], [0, 0, 1, 1], [], []>} : vector<4x16xbf16>, vector<16x256xbf16>, vector<4x256xf32> -> vector<4x256xf32>
    %233 = vector.broadcast %230 : vector<4x1xf32> to vector<4x256xf32>
    %234 = arith.addf %232, %233 : vector<4x256xf32>
    %235 = vector.extract_strided_slice %234 {offsets = [0, 0], sizes = [2, 256], strides = [1, 1]} : vector<4x256xf32> to vector<2x256xf32>
    %cst_90 = arith.constant 0.000000e+00 : f32
    %236 = vector.broadcast %cst_90 : f32 to vector<2x256xf32>
    %237 = arith.maximumf %235, %236 : vector<2x256xf32>
    %238 = vector.extract_strided_slice %234 {offsets = [2, 0], sizes = [2, 256], strides = [1, 1]} : vector<4x256xf32> to vector<2x256xf32>
    %c2_i32_91 = arith.constant 2 : i32
    %239 = tpu.dynamic_rotate %237 by %c2_i32_91 dim 1 : vector<2x256xf32>, i32 -> vector<2x256xf32>
    %cst_92 = arith.constant 0.000000e+00 : f32
    %240 = vector.shape_cast %36 : vector<1x256xi1> to vector<1x256xi1>
    %241 = vector.broadcast %240 : vector<1x256xi1> to vector<2x256xi1>
    %242 = vector.broadcast %cst_92 : f32 to vector<2x256xf32>
    %243 = arith.select %241, %239, %242 : vector<2x256xi1>, vector<2x256xf32>
    %c1_i32_93 = arith.constant 1 : i32
    %244 = tpu.dynamic_rotate %237 by %c1_i32_93 dim 1 : vector<2x256xf32>, i32 -> vector<2x256xf32>
    %cst_94 = arith.constant 0.000000e+00 : f32
    %245 = vector.shape_cast %45 : vector<1x256xi1> to vector<1x256xi1>
    %246 = vector.broadcast %245 : vector<1x256xi1> to vector<2x256xi1>
    %247 = vector.broadcast %cst_94 : f32 to vector<2x256xf32>
    %248 = arith.select %246, %244, %247 : vector<2x256xi1>, vector<2x256xf32>
    %c255_i32_95 = arith.constant 255 : i32
    %249 = tpu.dynamic_rotate %237 by %c255_i32_95 dim 1 : vector<2x256xf32>, i32 -> vector<2x256xf32>
    %cst_96 = arith.constant 0.000000e+00 : f32
    %250 = vector.shape_cast %54 : vector<1x256xi1> to vector<1x256xi1>
    %251 = vector.broadcast %250 : vector<1x256xi1> to vector<2x256xi1>
    %252 = vector.broadcast %cst_96 : f32 to vector<2x256xf32>
    %253 = arith.select %251, %249, %252 : vector<2x256xi1>, vector<2x256xf32>
    %c254_i32_97 = arith.constant 254 : i32
    %254 = tpu.dynamic_rotate %237 by %c254_i32_97 dim 1 : vector<2x256xf32>, i32 -> vector<2x256xf32>
    %cst_98 = arith.constant 0.000000e+00 : f32
    %255 = vector.shape_cast %63 : vector<1x256xi1> to vector<1x256xi1>
    %256 = vector.broadcast %255 : vector<1x256xi1> to vector<2x256xi1>
    %257 = vector.broadcast %cst_98 : f32 to vector<2x256xf32>
    %258 = arith.select %256, %254, %257 : vector<2x256xi1>, vector<2x256xf32>
    %259 = tpu.concatenate %243, %248, %237, %253, %258 in 0 : vector<2x256xf32>, vector<2x256xf32>, vector<2x256xf32>, vector<2x256xf32>, vector<2x256xf32> -> vector<10x256xf32>
    %c4 = arith.constant 4 : index
    %c0_99 = arith.constant 0 : index
    %c0_100 = arith.constant 0 : index
    %260 = vector.load %arg2[%c4, %c0_99, %c0_100] : memref<9x16x40xbf16, #tpu.memory_space<vmem>>, vector<1x16x40xbf16>
    %261 = vector.shape_cast %260 : vector<1x16x40xbf16> to vector<16x40xbf16>
    %262 = vector.extract_strided_slice %261 {offsets = [0, 0], sizes = [2, 10], strides = [1, 1]} : vector<16x40xbf16> to vector<2x10xbf16>
    %c4_101 = arith.constant 4 : index
    %c0_102 = arith.constant 0 : index
    %c0_103 = arith.constant 0 : index
    %263 = vector.load %arg3[%c4_101, %c0_102, %c0_103] : memref<9x16x1xf32, #tpu.memory_space<vmem>>, vector<1x16x1xf32>
    %264 = vector.shape_cast %263 : vector<1x16x1xf32> to vector<16x1xf32>
    %265 = vector.extract_strided_slice %264 {offsets = [0, 0], sizes = [2, 1], strides = [1, 1]} : vector<16x1xf32> to vector<2x1xf32>
    %266 = arith.truncf %259 : vector<10x256xf32> to vector<10x256xbf16>
    %cst_104 = arith.constant dense<0.000000e+00> : vector<2x256xf32>
    %267 = tpu.matmul %262, %266, %cst_104 {dimension_numbers = #tpu.dot_dimension_numbers<[1], [0], [0], [1], [0, 0, 1, 1], [], []>} : vector<2x10xbf16>, vector<10x256xbf16>, vector<2x256xf32> -> vector<2x256xf32>
    %268 = vector.broadcast %265 : vector<2x1xf32> to vector<2x256xf32>
    %269 = arith.addf %267, %268 : vector<2x256xf32>
    %cst_105 = arith.constant 0.000000e+00 : f32
    %270 = vector.broadcast %cst_105 : f32 to vector<2x256xf32>
    %271 = arith.maximumf %269, %270 : vector<2x256xf32>
    %c1_i32_106 = arith.constant 1 : i32
    %272 = tpu.dynamic_rotate %271 by %c1_i32_106 dim 1 : vector<2x256xf32>, i32 -> vector<2x256xf32>
    %cst_107 = arith.constant 0.000000e+00 : f32
    %273 = vector.shape_cast %45 : vector<1x256xi1> to vector<1x256xi1>
    %274 = vector.broadcast %273 : vector<1x256xi1> to vector<2x256xi1>
    %275 = vector.broadcast %cst_107 : f32 to vector<2x256xf32>
    %276 = arith.select %274, %272, %275 : vector<2x256xi1>, vector<2x256xf32>
    %c255_i32_108 = arith.constant 255 : i32
    %277 = tpu.dynamic_rotate %271 by %c255_i32_108 dim 1 : vector<2x256xf32>, i32 -> vector<2x256xf32>
    %cst_109 = arith.constant 0.000000e+00 : f32
    %278 = vector.shape_cast %54 : vector<1x256xi1> to vector<1x256xi1>
    %279 = vector.broadcast %278 : vector<1x256xi1> to vector<2x256xi1>
    %280 = vector.broadcast %cst_109 : f32 to vector<2x256xf32>
    %281 = arith.select %279, %277, %280 : vector<2x256xi1>, vector<2x256xf32>
    %282 = tpu.concatenate %276, %271, %281 in 0 : vector<2x256xf32>, vector<2x256xf32>, vector<2x256xf32> -> vector<6x256xf32>
    %c5 = arith.constant 5 : index
    %c0_110 = arith.constant 0 : index
    %c0_111 = arith.constant 0 : index
    %283 = vector.load %arg2[%c5, %c0_110, %c0_111] : memref<9x16x40xbf16, #tpu.memory_space<vmem>>, vector<1x16x40xbf16>
    %284 = vector.shape_cast %283 : vector<1x16x40xbf16> to vector<16x40xbf16>
    %285 = vector.extract_strided_slice %284 {offsets = [0, 0], sizes = [2, 6], strides = [1, 1]} : vector<16x40xbf16> to vector<2x6xbf16>
    %c5_112 = arith.constant 5 : index
    %c0_113 = arith.constant 0 : index
    %c0_114 = arith.constant 0 : index
    %286 = vector.load %arg3[%c5_112, %c0_113, %c0_114] : memref<9x16x1xf32, #tpu.memory_space<vmem>>, vector<1x16x1xf32>
    %287 = vector.shape_cast %286 : vector<1x16x1xf32> to vector<16x1xf32>
    %288 = vector.extract_strided_slice %287 {offsets = [0, 0], sizes = [2, 1], strides = [1, 1]} : vector<16x1xf32> to vector<2x1xf32>
    %289 = arith.truncf %282 : vector<6x256xf32> to vector<6x256xbf16>
    %cst_115 = arith.constant dense<0.000000e+00> : vector<2x256xf32>
    %290 = tpu.matmul %285, %289, %cst_115 {dimension_numbers = #tpu.dot_dimension_numbers<[1], [0], [0], [1], [0, 0, 1, 1], [], []>} : vector<2x6xbf16>, vector<6x256xbf16>, vector<2x256xf32> -> vector<2x256xf32>
    %291 = vector.broadcast %288 : vector<2x1xf32> to vector<2x256xf32>
    %292 = arith.addf %290, %291 : vector<2x256xf32>
    %293 = arith.addf %292, %238 : vector<2x256xf32>
    %cst_116 = arith.constant 0.000000e+00 : f32
    %294 = vector.broadcast %cst_116 : f32 to vector<2x256xf32>
    %295 = arith.maximumf %293, %294 : vector<2x256xf32>
    %c3_i32_117 = arith.constant 3 : i32
    %296 = tpu.dynamic_rotate %295 by %c3_i32_117 dim 1 : vector<2x256xf32>, i32 -> vector<2x256xf32>
    %cst_118 = arith.constant 0.000000e+00 : f32
    %297 = vector.shape_cast %27 : vector<1x256xi1> to vector<1x256xi1>
    %298 = vector.broadcast %297 : vector<1x256xi1> to vector<2x256xi1>
    %299 = vector.broadcast %cst_118 : f32 to vector<2x256xf32>
    %300 = arith.select %298, %296, %299 : vector<2x256xi1>, vector<2x256xf32>
    %c2_i32_119 = arith.constant 2 : i32
    %301 = tpu.dynamic_rotate %295 by %c2_i32_119 dim 1 : vector<2x256xf32>, i32 -> vector<2x256xf32>
    %cst_120 = arith.constant 0.000000e+00 : f32
    %302 = vector.shape_cast %36 : vector<1x256xi1> to vector<1x256xi1>
    %303 = vector.broadcast %302 : vector<1x256xi1> to vector<2x256xi1>
    %304 = vector.broadcast %cst_120 : f32 to vector<2x256xf32>
    %305 = arith.select %303, %301, %304 : vector<2x256xi1>, vector<2x256xf32>
    %c1_i32_121 = arith.constant 1 : i32
    %306 = tpu.dynamic_rotate %295 by %c1_i32_121 dim 1 : vector<2x256xf32>, i32 -> vector<2x256xf32>
    %cst_122 = arith.constant 0.000000e+00 : f32
    %307 = vector.shape_cast %45 : vector<1x256xi1> to vector<1x256xi1>
    %308 = vector.broadcast %307 : vector<1x256xi1> to vector<2x256xi1>
    %309 = vector.broadcast %cst_122 : f32 to vector<2x256xf32>
    %310 = arith.select %308, %306, %309 : vector<2x256xi1>, vector<2x256xf32>
    %c255_i32_123 = arith.constant 255 : i32
    %311 = tpu.dynamic_rotate %295 by %c255_i32_123 dim 1 : vector<2x256xf32>, i32 -> vector<2x256xf32>
    %cst_124 = arith.constant 0.000000e+00 : f32
    %312 = vector.shape_cast %54 : vector<1x256xi1> to vector<1x256xi1>
    %313 = vector.broadcast %312 : vector<1x256xi1> to vector<2x256xi1>
    %314 = vector.broadcast %cst_124 : f32 to vector<2x256xf32>
    %315 = arith.select %313, %311, %314 : vector<2x256xi1>, vector<2x256xf32>
    %c254_i32_125 = arith.constant 254 : i32
    %316 = tpu.dynamic_rotate %295 by %c254_i32_125 dim 1 : vector<2x256xf32>, i32 -> vector<2x256xf32>
    %cst_126 = arith.constant 0.000000e+00 : f32
    %317 = vector.shape_cast %63 : vector<1x256xi1> to vector<1x256xi1>
    %318 = vector.broadcast %317 : vector<1x256xi1> to vector<2x256xi1>
    %319 = vector.broadcast %cst_126 : f32 to vector<2x256xf32>
    %320 = arith.select %318, %316, %319 : vector<2x256xi1>, vector<2x256xf32>
    %c253_i32_127 = arith.constant 253 : i32
    %321 = tpu.dynamic_rotate %295 by %c253_i32_127 dim 1 : vector<2x256xf32>, i32 -> vector<2x256xf32>
    %cst_128 = arith.constant 0.000000e+00 : f32
    %322 = vector.shape_cast %72 : vector<1x256xi1> to vector<1x256xi1>
    %323 = vector.broadcast %322 : vector<1x256xi1> to vector<2x256xi1>
    %324 = vector.broadcast %cst_128 : f32 to vector<2x256xf32>
    %325 = arith.select %323, %321, %324 : vector<2x256xi1>, vector<2x256xf32>
    %c252_i32_129 = arith.constant 252 : i32
    %326 = tpu.dynamic_rotate %295 by %c252_i32_129 dim 1 : vector<2x256xf32>, i32 -> vector<2x256xf32>
    %cst_130 = arith.constant 0.000000e+00 : f32
    %327 = vector.shape_cast %81 : vector<1x256xi1> to vector<1x256xi1>
    %328 = vector.broadcast %327 : vector<1x256xi1> to vector<2x256xi1>
    %329 = vector.broadcast %cst_130 : f32 to vector<2x256xf32>
    %330 = arith.select %328, %326, %329 : vector<2x256xi1>, vector<2x256xf32>
    %331 = tpu.concatenate %300, %305, %310, %295, %315, %320, %325, %330 in 0 : vector<2x256xf32>, vector<2x256xf32>, vector<2x256xf32>, vector<2x256xf32>, vector<2x256xf32>, vector<2x256xf32>, vector<2x256xf32>, vector<2x256xf32> -> vector<16x256xf32>
    %c6 = arith.constant 6 : index
    %c0_131 = arith.constant 0 : index
    %c0_132 = arith.constant 0 : index
    %332 = vector.load %arg2[%c6, %c0_131, %c0_132] : memref<9x16x40xbf16, #tpu.memory_space<vmem>>, vector<1x16x40xbf16>
    %333 = vector.shape_cast %332 : vector<1x16x40xbf16> to vector<16x40xbf16>
    %334 = vector.extract_strided_slice %333 {offsets = [0, 0], sizes = [16, 16], strides = [1, 1]} : vector<16x40xbf16> to vector<16x16xbf16>
    %c6_133 = arith.constant 6 : index
    %c0_134 = arith.constant 0 : index
    %c0_135 = arith.constant 0 : index
    %335 = vector.load %arg3[%c6_133, %c0_134, %c0_135] : memref<9x16x1xf32, #tpu.memory_space<vmem>>, vector<1x16x1xf32>
    %336 = vector.shape_cast %335 : vector<1x16x1xf32> to vector<16x1xf32>
    %337 = arith.truncf %331 : vector<16x256xf32> to vector<16x256xbf16>
    %cst_136 = arith.constant dense<0.000000e+00> : vector<16x256xf32>
    %338 = tpu.matmul %334, %337, %cst_136 {dimension_numbers = #tpu.dot_dimension_numbers<[1], [0], [0], [1], [0, 0, 1, 1], [], []>} : vector<16x16xbf16>, vector<16x256xbf16>, vector<16x256xf32> -> vector<16x256xf32>
    %339 = vector.broadcast %336 : vector<16x1xf32> to vector<16x256xf32>
    %340 = arith.addf %338, %339 : vector<16x256xf32>
    %341 = vector.extract_strided_slice %340 {offsets = [0, 0], sizes = [8, 256], strides = [1, 1]} : vector<16x256xf32> to vector<8x256xf32>
    %cst_137 = arith.constant 0.000000e+00 : f32
    %342 = vector.broadcast %cst_137 : f32 to vector<8x256xf32>
    %343 = arith.maximumf %341, %342 : vector<8x256xf32>
    %344 = vector.extract_strided_slice %340 {offsets = [8, 0], sizes = [8, 256], strides = [1, 1]} : vector<16x256xf32> to vector<8x256xf32>
    %c2_i32_138 = arith.constant 2 : i32
    %345 = tpu.dynamic_rotate %343 by %c2_i32_138 dim 1 : vector<8x256xf32>, i32 -> vector<8x256xf32>
    %cst_139 = arith.constant 0.000000e+00 : f32
    %346 = vector.shape_cast %36 : vector<1x256xi1> to vector<1x256xi1>
    %347 = vector.broadcast %346 : vector<1x256xi1> to vector<8x256xi1>
    %348 = vector.broadcast %cst_139 : f32 to vector<8x256xf32>
    %349 = arith.select %347, %345, %348 : vector<8x256xi1>, vector<8x256xf32>
    %c1_i32_140 = arith.constant 1 : i32
    %350 = tpu.dynamic_rotate %343 by %c1_i32_140 dim 1 : vector<8x256xf32>, i32 -> vector<8x256xf32>
    %cst_141 = arith.constant 0.000000e+00 : f32
    %351 = vector.shape_cast %45 : vector<1x256xi1> to vector<1x256xi1>
    %352 = vector.broadcast %351 : vector<1x256xi1> to vector<8x256xi1>
    %353 = vector.broadcast %cst_141 : f32 to vector<8x256xf32>
    %354 = arith.select %352, %350, %353 : vector<8x256xi1>, vector<8x256xf32>
    %c255_i32_142 = arith.constant 255 : i32
    %355 = tpu.dynamic_rotate %343 by %c255_i32_142 dim 1 : vector<8x256xf32>, i32 -> vector<8x256xf32>
    %cst_143 = arith.constant 0.000000e+00 : f32
    %356 = vector.shape_cast %54 : vector<1x256xi1> to vector<1x256xi1>
    %357 = vector.broadcast %356 : vector<1x256xi1> to vector<8x256xi1>
    %358 = vector.broadcast %cst_143 : f32 to vector<8x256xf32>
    %359 = arith.select %357, %355, %358 : vector<8x256xi1>, vector<8x256xf32>
    %c254_i32_144 = arith.constant 254 : i32
    %360 = tpu.dynamic_rotate %343 by %c254_i32_144 dim 1 : vector<8x256xf32>, i32 -> vector<8x256xf32>
    %cst_145 = arith.constant 0.000000e+00 : f32
    %361 = vector.shape_cast %63 : vector<1x256xi1> to vector<1x256xi1>
    %362 = vector.broadcast %361 : vector<1x256xi1> to vector<8x256xi1>
    %363 = vector.broadcast %cst_145 : f32 to vector<8x256xf32>
    %364 = arith.select %362, %360, %363 : vector<8x256xi1>, vector<8x256xf32>
    %365 = tpu.concatenate %349, %354, %343, %359, %364 in 0 : vector<8x256xf32>, vector<8x256xf32>, vector<8x256xf32>, vector<8x256xf32>, vector<8x256xf32> -> vector<40x256xf32>
    %c7 = arith.constant 7 : index
    %c0_146 = arith.constant 0 : index
    %c0_147 = arith.constant 0 : index
    %366 = vector.load %arg2[%c7, %c0_146, %c0_147] : memref<9x16x40xbf16, #tpu.memory_space<vmem>>, vector<1x16x40xbf16>
    %367 = vector.shape_cast %366 : vector<1x16x40xbf16> to vector<16x40xbf16>
    %368 = vector.extract_strided_slice %367 {offsets = [0, 0], sizes = [8, 40], strides = [1, 1]} : vector<16x40xbf16> to vector<8x40xbf16>
    %c7_148 = arith.constant 7 : index
    %c0_149 = arith.constant 0 : index
    %c0_150 = arith.constant 0 : index
    %369 = vector.load %arg3[%c7_148, %c0_149, %c0_150] : memref<9x16x1xf32, #tpu.memory_space<vmem>>, vector<1x16x1xf32>
    %370 = vector.shape_cast %369 : vector<1x16x1xf32> to vector<16x1xf32>
    %371 = vector.extract_strided_slice %370 {offsets = [0, 0], sizes = [8, 1], strides = [1, 1]} : vector<16x1xf32> to vector<8x1xf32>
    %372 = arith.truncf %365 : vector<40x256xf32> to vector<40x256xbf16>
    %cst_151 = arith.constant dense<0.000000e+00> : vector<8x256xf32>
    %373 = tpu.matmul %368, %372, %cst_151 {dimension_numbers = #tpu.dot_dimension_numbers<[1], [0], [0], [1], [0, 0, 1, 1], [], []>} : vector<8x40xbf16>, vector<40x256xbf16>, vector<8x256xf32> -> vector<8x256xf32>
    %374 = vector.broadcast %371 : vector<8x1xf32> to vector<8x256xf32>
    %375 = arith.addf %373, %374 : vector<8x256xf32>
    %cst_152 = arith.constant 0.000000e+00 : f32
    %376 = vector.broadcast %cst_152 : f32 to vector<8x256xf32>
    %377 = arith.maximumf %375, %376 : vector<8x256xf32>
    %c1_i32_153 = arith.constant 1 : i32
    %378 = tpu.dynamic_rotate %377 by %c1_i32_153 dim 1 : vector<8x256xf32>, i32 -> vector<8x256xf32>
    %cst_154 = arith.constant 0.000000e+00 : f32
    %379 = vector.shape_cast %45 : vector<1x256xi1> to vector<1x256xi1>
    %380 = vector.broadcast %379 : vector<1x256xi1> to vector<8x256xi1>
    %381 = vector.broadcast %cst_154 : f32 to vector<8x256xf32>
    %382 = arith.select %380, %378, %381 : vector<8x256xi1>, vector<8x256xf32>
    %c255_i32_155 = arith.constant 255 : i32
    %383 = tpu.dynamic_rotate %377 by %c255_i32_155 dim 1 : vector<8x256xf32>, i32 -> vector<8x256xf32>
    %cst_156 = arith.constant 0.000000e+00 : f32
    %384 = vector.shape_cast %54 : vector<1x256xi1> to vector<1x256xi1>
    %385 = vector.broadcast %384 : vector<1x256xi1> to vector<8x256xi1>
    %386 = vector.broadcast %cst_156 : f32 to vector<8x256xf32>
    %387 = arith.select %385, %383, %386 : vector<8x256xi1>, vector<8x256xf32>
    %388 = tpu.concatenate %382, %377, %387 in 0 : vector<8x256xf32>, vector<8x256xf32>, vector<8x256xf32> -> vector<24x256xf32>
    %c8 = arith.constant 8 : index
    %c0_157 = arith.constant 0 : index
    %c0_158 = arith.constant 0 : index
    %389 = vector.load %arg2[%c8, %c0_157, %c0_158] : memref<9x16x40xbf16, #tpu.memory_space<vmem>>, vector<1x16x40xbf16>
    %390 = vector.shape_cast %389 : vector<1x16x40xbf16> to vector<16x40xbf16>
    %391 = vector.extract_strided_slice %390 {offsets = [0, 0], sizes = [8, 24], strides = [1, 1]} : vector<16x40xbf16> to vector<8x24xbf16>
    %c8_159 = arith.constant 8 : index
    %c0_160 = arith.constant 0 : index
    %c0_161 = arith.constant 0 : index
    %392 = vector.load %arg3[%c8_159, %c0_160, %c0_161] : memref<9x16x1xf32, #tpu.memory_space<vmem>>, vector<1x16x1xf32>
    %393 = vector.shape_cast %392 : vector<1x16x1xf32> to vector<16x1xf32>
    %394 = vector.extract_strided_slice %393 {offsets = [0, 0], sizes = [8, 1], strides = [1, 1]} : vector<16x1xf32> to vector<8x1xf32>
    %395 = arith.truncf %388 : vector<24x256xf32> to vector<24x256xbf16>
    %cst_162 = arith.constant dense<0.000000e+00> : vector<8x256xf32>
    %396 = tpu.matmul %391, %395, %cst_162 {dimension_numbers = #tpu.dot_dimension_numbers<[1], [0], [0], [1], [0, 0, 1, 1], [], []>} : vector<8x24xbf16>, vector<24x256xbf16>, vector<8x256xf32> -> vector<8x256xf32>
    %397 = vector.broadcast %394 : vector<8x1xf32> to vector<8x256xf32>
    %398 = arith.addf %396, %397 : vector<8x256xf32>
    %399 = arith.addf %398, %344 : vector<8x256xf32>
    %cst_163 = arith.constant 0.000000e+00 : f32
    %400 = vector.broadcast %cst_163 : f32 to vector<8x256xf32>
    %401 = arith.maximumf %399, %400 : vector<8x256xf32>
    %c0_164 = arith.constant 0 : index
    %c0_165 = arith.constant 0 : index
    %c0_166 = arith.constant 0 : index
    %402 = vector.load %arg4[%c0_164, %c0_165, %c0_166] : memref<1x8x256xf32, #tpu.memory_space<vmem>>, vector<1x8x256xf32>
    %403 = vector.shape_cast %402 : vector<1x8x256xf32> to vector<8x256xf32>
    %404 = vector.shape_cast %401 : vector<8x256xf32> to vector<1x8x256xf32>
    tpu.vector_store %arg4[%c0_164, %c0_165, %c0_166], %404 {strides = array<i32>} : memref<1x8x256xf32, #tpu.memory_space<vmem>>, vector<1x8x256xf32>,
    return
  }
  func.func @transform_0(%arg0: i32) -> (i32, i32, i32) {
    %c0_i32 = arith.constant 0 : i32
    %c0_i32_0 = arith.constant 0 : i32
    %c0_i32_1 = arith.constant 0 : i32
    return %arg0, %c0_i32, %c0_i32_0 : i32, i32, i32
  }
  func.func @transform_1(%arg0: i32) -> (i32, i32, i32) {
    %c0_i32 = arith.constant 0 : i32
    %c0_i32_0 = arith.constant 0 : i32
    %c0_i32_1 = arith.constant 0 : i32
    %c0_i32_2 = arith.constant 0 : i32
    return %c0_i32, %c0_i32_0, %c0_i32_1 : i32, i32, i32
  }
  func.func @transform_2(%arg0: i32) -> (i32, i32, i32) {
    %c0_i32 = arith.constant 0 : i32
    %c0_i32_0 = arith.constant 0 : i32
    %c0_i32_1 = arith.constant 0 : i32
    %c0_i32_2 = arith.constant 0 : i32
    return %c0_i32, %c0_i32_0, %c0_i32_1 : i32, i32, i32
  }
  func.func @transform_3(%arg0: i32) -> (i32, i32, i32) {
    %c0_i32 = arith.constant 0 : i32
    %c0_i32_0 = arith.constant 0 : i32
    %c0_i32_1 = arith.constant 0 : i32
    return %arg0, %c0_i32, %c0_i32_0 : i32, i32, i32
  }
}

</mosaic_0001>

<bundles_post_ra>
// kernel: tpu_custom_call.1
= control target key start
LH: loop header
LB: loop body
LE: loop exit
PB: predicated region body
PF: predicated region fallthrough
CT: control target
= control target key end

     0   :  { %8 = vsyncpa [#allocation3], 0  ;;  %s2519_s0 = inlined_call_operand.vmem [shape: f32[2,3,256], index: 0, kind: input, shape index: {}]   ;;  %s2520_s1 = inlined_call_operand.vmem [shape: bf16[9,16,40], index: 1, kind: input, shape index: {}]   ;;  %s2521_s2 = inlined_call_operand.vmem [shape: f32[9,16,1], index: 2, kind: input, shape index: {}]   ;;  %s2522_s3 = inlined_call_operand.hbm [shape: f32[2,8,256], index: 3, kind: output, shape index: {}]  }
   0x1   :  { %10 = vsyncpa [#allocation3 + $0x1], 0  ;;  %s1830_s12 = smov 0   ;;  %s1832_s13 = smov 0  }
   0x2   :  { %s1834_s14 = smov 0   ;;  %s1836_s15 = smov 0  }
   0x3 LB: > { %s1851_s16 = sadd.s32 4294967295, %s1799_s15   ;;  %s1418_s17 = sadd.s32 4294967294, %s1799_s15   ;;  %s1799_s15 = sphi %s1836_s15, %s2631_s15   ;;  %s1795_s14 = sphi %s1834_s14, %s2630_s14   ;;  %s1791_s13 = sphi %s1832_s13, %s2629_s13   ;;  %s1787_s12 = sphi %s1830_s12, %s2628_s12  }
   0x4   : > { %s1855_s18 = sadd.s32 1, %s1799_s15   ;;  %s91_s19 = sadd.s32 1, %s1795_s14 }
   0x5   : > { %s88_s20 = ssub.s32 %s1799_s15, %s1855_s18  ;;  %p101_p0 = scmp.ne.s32.totalorder %s1795_s14, %s1791_s13 }
   0x6   : > { %p89_p1 = scmp.eq.s32.totalorder %s88_s20, 0  ;;  %p102_p2 = scmp.eq.s32.totalorder %s1851_s16, 1 }
   0x7   : > { %p107_p3 = scmp.ne.s32.totalorder %s1791_s13, %s1787_s12  ;;  %p108_p4 = scmp.eq.s32.totalorder %s1418_s17, 1 }
   0x8   : > { %s1866_s21 = scalar_select %p89_p1, %s1795_s14, %s91_s19  }
   0x9   : > { %p1868_p5 = por %p102_p2, %p101_p0  ;;  %p1872_p6 = por %p108_p4, %p107_p3 }
   0xa   : > { %p1421_p7 = scmp.ge.s32.totalorder %s1799_s15, 1  ;;  %p140_p8 = scmp.lt.s32.totalorder %s1799_s15, 3 }
   0xc   : > { %p141_p9 = pnand %p1421_p7, %p140_p8 }
   0xd   : > { %p164_p10 = scmp.lt.s32.totalorder (!%p141_p9), %s1851_s16, 1  ;;  %s1801_s29 = smov (!%p141_p9), 2  }
   0xe   : > { %144 = sbr.rel (%p141_p9) target bundleno = 2498 (0x9c2), region = 32  ;;  %s1802_s30 = smov (!%p141_p9), 126  }
   0xf   : > { %s1803_s4 = smov (!%p141_p9), 127   ;;  %s1804_s5 = smov (!%p141_p9), 125  }
  0x10   : > { %s1805_s6 = smov (!%p141_p9), 124   ;;  %s1806_s7 = smov (!%p141_p9), 3  }
  0x11   : > { %s1807_s8 = smov (!%p141_p9), 1   ;;  %s161_s27 = sand.u32 (!%p141_p9), 1, %s1791_s13  }
  0x12   : > { %s1490_s9 = sshll.u32 (!%p141_p9), %s1851_s16, 4 }
  0x13   : > { %s165_s24 = scalar_select %p164_p10, %s1851_s16, 1  ;;  %v171_v22 = vlaneseq  ;;  %v446_v36 = vld [vmem:[%s2521_s2] sm:$0xff]  ;;  %v1808_v42 = vmov 0   ;;  %vm2534_vm11 = vcmask 1041408   ;;  %vm2532_vm15 = vcmask 1044480  }
  0x14   : > { %1574 = vset.pattern.permute.xlu1 %v1808_v42  ;;  %1595 = vset.pattern.permute.xlu0 %v1808_v42  ;;  %s1354_s17 = scalar_lea.hbm %s2522_s3, %s1490_s9  ;;  %s1343_s16 = scalar_lea.sflag [#allocation3], %s161_s27 }
  0x15   : > { %s1488_s25 = sshll.u32 %s165_s24, 3  ;;  %v1890_v23 = vand.u32 127, %v171_v22  ;;  %1661 = vset.pattern.permute.xlu2 %v1808_v42 }
  0x16   : > { %s168_s28 = scalar_lea.vmem %s2519_s0, %s1488_s25 }
  0x17   : > { %v170_v0 = vld [vmem:[%s168_s28] sm:$0x77]  ;;  %v173_v24 = vadd.s32 128, %v1890_v23  ;;  %v1896_v28 = vadd.s32 4294967294, %v1890_v23  ;;  %v1902_v32 = vadd.s32 2, %v1890_v23  ;;  %vm282_vm0 = vcmp.lt.s32.totalorder %v1890_v23, 2 }
  0x18   : > { %255 = vst [vmem:[#allocation1] ss:$2 sm:$0xff] %v170_v0  ;;  %vm2538_vm1 = vcmp.lt.s32.totalorder %v1890_v23, 126  ;;  %v1910_v34 = vadd.s32 3, %v1890_v23  ;;  %vm2525_vm2 = vcmp.lt.s32.totalorder %v1890_v23, 125  ;;  %v1926_v45 = vadd.s32 4, %v1890_v23 }
  0x19   : > { %v1893_v26 = vand.u32 127, %v173_v24  ;;  %vm2542_vm3 = vcmp.ge.s32.totalorder %v1896_v28, 0  ;;  %vm2527_vm5 = vcmp.lt.s32.totalorder %v1902_v32, 128  ;;  %vm2528_vm9 = vcmp.lt.s32.totalorder %v1890_v23, 124  ;;  %s1422_s28 = sshll.u32 %s161_s27, 4 }
  0x1a   : > { %vm2523_vm7 = vcmp.lt.s32.totalorder %v1910_v34, 128  ;;  %vm2530_vm10 = vcmp.lt.s32.totalorder %v1926_v45, 128  ;;  %v1957_v56 = vadd.s32 4294967293, %v1890_v23  ;;  %vm2533_vm13 = vcmp.lt.s32.totalorder %v1890_v23, 3 }
  0x1b   : > { %v1899_v29 = vadd.s32 4294967294, %v1893_v26  ;;  %v1906_v33 = vadd.s32 2, %v1893_v26  ;;  %v1913_v35 = vadd.s32 3, %v1893_v26  ;;  %v1929_v46 = vadd.s32 4, %v1893_v26 }
  0x1c   : > { %v1960_v57 = vadd.s32 4294967293, %v1893_v26  ;;  %vm2543_vm14 = vcmp.lt.s32.totalorder %v1890_v23, 1  ;;  %v1977_v63 = vadd.s32 1, %v1890_v23 }
  0x1d   : > { %vm2531_vm4 = vcmp.ge.s32.totalorder %v1899_v29, 0  ;;  %vm2526_vm6 = vcmp.lt.s32.totalorder %v1906_v33, 128  ;;  %vm2524_vm8 = vcmp.lt.s32.totalorder %v1913_v35, 128  ;;  %vm2529_vm12 = vcmp.lt.s32.totalorder %v1929_v46, 128 }
  0x1f   : > { %v256_v1 = vld.sshfl [vmem:[#allocation1] sm:$0xff pattern:$0x75316420]  ;;  %v257_v2 = vld.sshfl [vmem:[#allocation1 + $0x8] sm:$0xff pattern:$0x75316420] }
  0x20   : > { %273 = vst [vmem:[#allocation1] ss:$2 sm:$0xff] %v170_v0  ;;  %v1569_v17 = vpack.i.bf16 %v257_v2, %v256_v1 }
  0x27   : > { %v274_v3 = vld.sshfl [vmem:[#allocation1] sm:$0xff pattern:$0x75316420]  ;;  %v275_v4 = vld.sshfl [vmem:[#allocation1 + $0x8] sm:$0xff pattern:$0x75316420] }
  0x28   : > { %291 = vst [vmem:[#allocation1] ss:$2 sm:$0xff] %v170_v0  ;;  %v1559_v9 = vpack.i.bf16 %v275_v4, %v274_v3 }
  0x2a   : > { %1560 = vrot.lane.b32.xlu2 %v1559_v9, %s1801_s29 }
  0x2f   : > { %v292_v5 = vld.sshfl [vmem:[#allocation1] sm:$0xff pattern:$0x75316420]  ;;  %v293_v6 = vld.sshfl [vmem:[#allocation1 + $0x8] sm:$0xff pattern:$0x75316420] }
  0x30   : > { %309 = vst [vmem:[#allocation1] ss:$2 sm:$0xff] %v170_v0  ;;  %v1554_v21 = vpack.i.bf16 %v293_v6, %v292_v5 }
  0x37   : > { %v310_v7 = vld.sshfl [vmem:[#allocation1] sm:$0xff pattern:$0x75316420]  ;;  %v311_v8 = vld.sshfl [vmem:[#allocation1 + $0x8] sm:$0xff pattern:$0x75316420] }
  0x38   : > { %327 = vst [vmem:[#allocation1] ss:$2 sm:$0xff] %v170_v0  ;;  %v1564_v13 = vpack.i.bf16 %v311_v8, %v310_v7 }
  0x3a   : > { %1565 = vrot.lane.b32.xlu2 %v1564_v13, %s1803_s4  ;;  %v1995_v13 = vadd.s32 4294967295, %v1893_v26 }
  0x3f   : > { %v328_v10 = vld.sshfl [vmem:[#allocation1] sm:$0xff pattern:$0x75316420]  ;;  %v329_v11 = vld.sshfl [vmem:[#allocation1 + $0x8] sm:$0xff pattern:$0x75316420] }
  0x40   : > { %v1539_v12 = vpack.i.bf16 %v329_v11, %v328_v10  ;;  %345 = vst [vmem:[#allocation1] ss:$2 sm:$0xff] %v170_v0 }
  0x42   : > { %1540 = vrot.lane.b32.xlu0 %v1539_v12, %s1802_s30  ;;  %v1992_v12 = vadd.s32 4294967295, %v1890_v23 }
  0x47   : > { %v346_v14 = vld.sshfl [vmem:[#allocation1] sm:$0xff pattern:$0x75316420]  ;;  %v347_v15 = vld.sshfl [vmem:[#allocation1 + $0x8] sm:$0xff pattern:$0x75316420] }
  0x48   : > { %v1544_v16 = vpack.i.bf16 %v347_v15, %v346_v14  ;;  %363 = vst [vmem:[#allocation1] ss:$2 sm:$0xff] %v170_v0 }
  0x4a   : > { %1545 = vrot.lane.b32.xlu0 %v1544_v16, %s1804_s5 }
  0x4f   : > { %v364_v18 = vld.sshfl [vmem:[#allocation1] sm:$0xff pattern:$0x75316420]  ;;  %v365_v19 = vld.sshfl [vmem:[#allocation1 + $0x8] sm:$0xff pattern:$0x75316420] }
  0x50   : > { %v1549_v20 = vpack.i.bf16 %v365_v19, %v364_v18  ;;  %393 = vst [vmem:[#allocation1] ss:$2 sm:$0xff] %v170_v0  ;;  %v1980_v0 = vadd.s32 1, %v1893_v26 }
  0x52   : > { %1550 = vrot.lane.b32.xlu1 %v1549_v20, %s1805_s6  ;;  %1570 = vrot.lane.b32.xlu0 %v1569_v17, %s1806_s7 }
  0x5a   : > { %1555 = vrot.lane.b32.xlu1 %v1554_v21, %s1807_s8 }
  0x62   : > { %453 = vperm.xlu1 %1574, %v446_v36  }
  0x84   : > { %v1561_v27 = vpop.permute.xlu2 %1560 }
  0x85   : > { %v1563_v30 = vunpack.i.h.bf16 %v1561_v27  ;;  %v1562_v31 = vunpack.i.l.bf16 %v1561_v27 }
  0x87   : > { %v283_v40 = vsel %vm282_vm0, %v1562_v31, %v1563_v30  ;;  %v284_v41 = vsel %vm282_vm0, %v1563_v30, %v1562_v31 }
  0x88   : > { %v1937_v47 = vsel %vm2542_vm3, %v284_v41, 0.0  ;;  %v1941_v48 = vsel %vm2531_vm4, %v283_v40, 0.0  ;;  %vm217_vm4 = vcmp.ge.s32.totalorder %v1995_v13, 0 }
  0x89   : > { %v383_v54 = vrot.slane %v1937_v47, 5  ;;  %v384_v55 = vrot.slane %v1941_v48, 5  ;;  %v445_v48 = vld [vmem:[%s2520_s1] sm:$0xf] }
  0x94   : > { %v1566_v53 = vpop.permute.xlu2 %1565 }
  0x95   : > { %v1568_v1 = vunpack.i.h.bf16 %v1566_v53  ;;  %v1567_v4 = vunpack.i.l.bf16 %v1566_v53 }
  0xb4   : > { %v1541_v25 = vpop.permute.xlu0 %1540 }
  0xb5   : > { %v1543_v37 = vunpack.i.h.bf16 %v1541_v25  ;;  %v1542_v38 = vunpack.i.l.bf16 %v1541_v25  ;;  %v394_v25 = vld.sshfl [vmem:[#allocation1] sm:$0xff pattern:$0x75316420] }
  0xb6   : > { %v396_v42 = vrot.slane %v394_v25, 7 }
  0xb7   : > { %v337_v49 = vsel %vm2538_vm1, %v1542_v38, %v1543_v37  ;;  %v338_v50 = vsel %vm2538_vm1, %v1543_v37, %v1542_v38  ;;  %v395_v38 = vld.sshfl [vmem:[#allocation1 + $0x8] sm:$0xff pattern:$0x75316420] }
  0xb8   : > { %v1964_v58 = vsel %vm2527_vm5, %v337_v49, 0.0  ;;  %v1968_v59 = vsel %vm2526_vm6, %v338_v50, 0.0  ;;  %vm226_vm6 = vcmp.lt.s32.totalorder %v1977_v63, 128  ;;  %vm227_vm5 = vcmp.lt.s32.totalorder %v1980_v0, 128 }
  0xb9   : > { %v408_v5 = vrot.slane %v1964_v58, 1  ;;  %v409_v6 = vrot.slane %v1968_v59, 1 }
  0xbc   : > { %v1546_v39 = vpop.permute.xlu0 %1545 }
  0xbd   : > { %v1548_v43 = vunpack.i.h.bf16 %v1546_v39  ;;  %v1547_v44 = vunpack.i.l.bf16 %v1546_v39 }
  0xbf   : > { %v355_v51 = vsel %vm2525_vm2, %v1547_v44, %v1548_v43  ;;  %v356_v52 = vsel %vm2525_vm2, %v1548_v43, %v1547_v44  ;;  %vm2536_vm2 = vcmp.ge.s32.totalorder %v1960_v57, 0 }
  0xc0   : > { %v361_v60 = vsel %vm2523_vm7, %v355_v51, 0.0  ;;  %v362_v61 = vsel %vm2524_vm8, %v356_v52, 0.0  ;;  %vm318_vm7 = vcmp.lt.s32.totalorder %v1890_v23, 127  ;;  %vm2537_vm8 = vcmp.ge.s32.totalorder %v1957_v56, 0 }
  0xc1   : > { %v414_v7 = vrot.slane %v361_v60, 6  ;;  %v415_v8 = vrot.slane %v362_v61, 6  ;;  %v319_v16 = vsel %vm318_vm7, %v1567_v4, %v1568_v1  ;;  %v320_v17 = vsel %vm318_vm7, %v1568_v1, %v1567_v4 }
  0xc2   : > { %v325_v31 = vsel %vm226_vm6, %v319_v16, 0.0  ;;  %v326_v41 = vsel %vm227_vm5, %v320_v17, 0.0  ;;  %v397_v60 = vrot.slane %v395_v38, 7 }
  0xc3   : > { %v440_v22 = vsel %vm2534_vm11, %v408_v5, %v414_v7  ;;  %v441_v24 = vsel %vm2534_vm11, %v409_v6, %v415_v8  ;;  %v402_v53 = vrot.slane %v325_v31, 4  ;;  %v403_v61 = vrot.slane %v326_v41, 4 }
  0xc4   : > { %v1551_v62 = vpop.permute.xlu1 %1550  ;;  %v1571_v11 = vpop.permute.xlu0 %1570  ;;  %vm436_vm11 = vcmask 1046528  }
  0xc5   : > { %v1553_v2 = vunpack.i.h.bf16 %v1551_v62  ;;  %v1552_v3 = vunpack.i.l.bf16 %v1551_v62  ;;  %v1573_v20 = vunpack.i.h.bf16 %v1571_v11  ;;  %v1572_v21 = vunpack.i.l.bf16 %v1571_v11 }
  0xc7   : > { %v373_v9 = vsel %vm2528_vm9, %v1552_v3, %v1553_v2  ;;  %v374_v10 = vsel %vm2528_vm9, %v1553_v2, %v1552_v3  ;;  %vm2540_vm9 = vcmask 1042432   ;;  %v265_v43 = vsel %vm2533_vm13, %v1572_v21, %v1573_v20 }
  0xc8   : > { %v379_v14 = vsel %vm2530_vm10, %v373_v9, 0.0  ;;  %v380_v15 = vsel %vm2529_vm12, %v374_v10, 0.0  ;;  %vm433_vm12 = vcmask 1043456   ;;  %vm216_vm10 = vcmp.ge.s32.totalorder %v1992_v12, 0 }
  0xc9   : > { %v420_v18 = vrot.slane %v379_v14, 3  ;;  %v421_v19 = vrot.slane %v380_v15, 3  ;;  %v266_v44 = vsel %vm2533_vm13, %v1573_v20, %v1572_v21  ;;  %v272_v4 = vsel %vm2536_vm2, %v265_v43, 0.0 }
  0xca   : > { %v271_v2 = vsel %vm2537_vm8, %v266_v44, 0.0  ;;  %vm427_vm13 = vcmask 1045504   ;;  %v426_v14 = vsel %vm2540_vm9, %v272_v4, %v384_v55  ;;  %vm2549_vm8 = vcmp.lt.s32.totalorder %v1902_v32, 128 }
  0xcb   : > { %v443_v26 = vsel %vm2532_vm15, %v440_v22, %v420_v18  ;;  %v444_v27 = vsel %vm2532_vm15, %v441_v24, %v421_v19  ;;  %vm430_vm15 = vcmask 1040384   ;;  %v425_v10 = vsel %vm2540_vm9, %v271_v2, %v383_v54 }
  0xcc   : > { %v1556_v30 = vpop.permute.xlu1 %1555  ;;  %v449_v36 = vpack.c.bf16 %v443_v26, %v443_v26  ;;  %v450_v37 = vpack.c.bf16 %v444_v27, %v444_v27  ;;  %v1428_v26 = vld [vmem:[%s2521_s2 + $0x10] sm:$0xff] }
  0xcd   : > { %v1558_v39 = vunpack.i.h.bf16 %v1556_v30  ;;  %v1557_v40 = vunpack.i.l.bf16 %v1556_v30 }
  0xce   : > { %v461_v49 = vsel %vm433_vm12, %v449_v36, 0  ;;  %v464_v50 = vsel %vm433_vm12, %v450_v37, 0 }
  0xcf   : > { %v301_v51 = vsel %vm2543_vm14, %v1557_v40, %v1558_v39  ;;  %v302_v52 = vsel %vm2543_vm14, %v1558_v39, %v1557_v40  ;;  %472 = vmatpush.bf16.msra.mxu0 %v461_v49  ;;  %485 = vmatpush.bf16.msra.mxu1 %v464_v50 }
  0xd0   : > { %v307_v62 = vsel %vm216_vm10, %v302_v52, 0.0  ;;  %v308_v1 = vsel %vm217_vm4, %v301_v51, 0.0 }
  0xd1   : > { %v389_v3 = vrot.slane %v307_v62, 2  ;;  %v390_v7 = vrot.slane %v308_v1, 2 }
  0xd3   : > { %v431_v8 = vsel %vm430_vm15, %v389_v3, %v396_v42  ;;  %v432_v9 = vsel %vm430_vm15, %v390_v7, %v397_v60  ;;  %v428_v16 = vsel %vm427_vm13, %v425_v10, %v389_v3  ;;  %v429_v18 = vsel %vm427_vm13, %v426_v14, %v390_v7 }
  0xd4   : > { %v434_v11 = vsel %vm433_vm12, %v431_v8, %v402_v53  ;;  %v435_v15 = vsel %vm433_vm12, %v432_v9, %v403_v61  ;;  %vm2535_vm15 = vcmask 195584   ;;  %v454_v55 = vpop.permute.xlu1 %453 }
  0xd5   : > { %v437_v17 = vsel %vm436_vm11, %v434_v11, %v408_v5  ;;  %v438_v47 = vsel %vm436_vm11, %v435_v15, %v409_v6  ;;  %vm2546_vm11 = vcmp.ge.s32.totalorder %v1899_v29, 0 }
  0xd6   : > { %v447_v19 = vpack.c.bf16 %v437_v17, %v428_v16  ;;  %v448_v54 = vpack.c.bf16 %v438_v47, %v429_v18 }
  0xd8   : > { %473 = vmatpush.bf16.msra.mxu0 %v447_v19  ;;  %486 = vmatpush.bf16.msra.mxu1 %v448_v54 }
  0xdb   : > { %1425 = vmatmul.msk.bf16.vlgmr.msra.gmra.mxu0 %vm2535_vm15, %v445_v48  ;;  %1426 = vmatmul.msk.bf16.vlgmr.msra.gmra.mxu1 %vm2535_vm15, %v445_v48  ;;  %vm2547_vm15 = vcmask 1041408  }
  0xdc   : > { %vm2548_vm2 = vmmov %vm2547_vm15 }
 0x158   : > { %v475_v58 = vpop.f32.mrf.mxu0  ;;  %v488_v5 = vpop.f32.mrf.mxu1 }
 0x159   : > { %v2058_v20 = vadd.f32 %v475_v58, %v454_v55  ;;  %v2060_v59 = vadd.f32 %v488_v5, %v454_v55 }
 0x15b   : > { %v492_v6 = vmax.f32 %v2058_v20, 0.0  ;;  %v493_v21 = vmax.f32 %v2060_v59, 0.0 }
 0x15d   : > { %v1585_v22 = vpack.i.bf16 %v493_v21, %v492_v6  ;;  %v534_v49 = vrot.slane %v492_v6, 4  ;;  %v535_v50 = vrot.slane %v493_v21, 4 }
 0x15f   : > { %1586 = vrot.lane.b32.xlu1 %v1585_v22, %s1803_s4  ;;  %1581 = vrot.lane.b32.xlu0 %v1585_v22, %s1801_s29 }
 0x160   : > { %1576 = vrot.lane.b32.xlu2 %v1585_v22, %s1807_s8  ;;  %v477_v24 = vpop.f32.mrf.mxu0  ;;  %v490_v25 = vpop.f32.mrf.mxu1 }
 0x161   : > { %v1427_v24 = vld [vmem:[%s2520_s1 + $0x8] sm:$0xf] }
 0x167   : > { %558 = vperm.xlu0 %1595, %v1428_v26  }
 0x168   : > { %1591 = vrot.lane.b32.xlu2 %v1585_v22, %s1802_s30 }
 0x1ba   : > { %v1577_v27 = vpop.permute.xlu2 %1576 }
 0x1bb   : > { %v1579_v30 = vunpack.i.h.bf16 %v1577_v27  ;;  %v1578_v31 = vunpack.i.l.bf16 %v1577_v27 }
 0x1bd   : > { %v506_v37 = vsel %vm2543_vm14, %v1578_v31, %v1579_v30  ;;  %v507_v38 = vsel %vm2543_vm14, %v1579_v30, %v1578_v31 }
 0x1be   : > { %v508_v41 = vsel %vm216_vm10, %v507_v38, 0.0  ;;  %v509_v42 = vsel %vm217_vm4, %v506_v37, 0.0 }
 0x1bf   : > { %v528_v61 = vrot.slane %v508_v41, 6  ;;  %v529_v62 = vrot.slane %v509_v42, 6  ;;  %v1432_v41 = vld [vmem:[%s2521_s2 + $0x20] sm:$0xff] }
 0x1c2   : > { %v1592_v36 = vpop.permute.xlu2 %1591 }
 0x1c3   : > { %v1594_v39 = vunpack.i.h.bf16 %v1592_v36  ;;  %v1593_v40 = vunpack.i.l.bf16 %v1592_v36 }
 0x1c5   : > { %v522_v1 = vsel %vm2538_vm1, %v1593_v40, %v1594_v39  ;;  %v523_v2 = vsel %vm2538_vm1, %v1594_v39, %v1593_v40  ;;  %vm2550_vm1 = vcmp.lt.s32.totalorder %v1906_v33, 128 }
 0x1c6   : > { %v524_v54 = vsel %vm2549_vm8, %v522_v1, 0.0  ;;  %v525_v55 = vsel %vm2550_vm1, %v523_v2, 0.0  ;;  %vm2553_vm1 = vcmask 1041408  }
 0x1c7   : > { %vm2554_vm8 = vmmov %vm2553_vm1 }
 0x1d1   : > { %v1587_v43 = vpop.permute.xlu1 %1586  ;;  %v1582_v44 = vpop.permute.xlu0 %1581 }
 0x1d2   : > { %v1589_v51 = vunpack.i.h.bf16 %v1587_v43  ;;  %v1588_v52 = vunpack.i.l.bf16 %v1587_v43  ;;  %v1584_v53 = vunpack.i.h.bf16 %v1582_v44  ;;  %v1583_v60 = vunpack.i.l.bf16 %v1582_v44 }
 0x1d4   : > { %v514_v3 = vsel %vm318_vm7, %v1588_v52, %v1589_v51  ;;  %v515_v4 = vsel %vm318_vm7, %v1589_v51, %v1588_v52  ;;  %v498_v7 = vsel %vm282_vm0, %v1583_v60, %v1584_v53  ;;  %v499_v8 = vsel %vm282_vm0, %v1584_v53, %v1583_v60 }
 0x1d5   : > { %v516_v9 = vsel %vm226_vm6, %v514_v3, 0.0  ;;  %v517_v10 = vsel %vm227_vm5, %v515_v4, 0.0  ;;  %v500_v11 = vsel %vm2542_vm3, %v499_v8, 0.0  ;;  %v501_v14 = vsel %vm2546_vm11, %v498_v7, 0.0 }
 0x1d6   : > { %v540_v15 = vrot.slane %v516_v9, 2  ;;  %v544_v16 = vsel %vm2547_vm15, %v500_v11, %v528_v61  ;;  %v541_v17 = vrot.slane %v517_v10, 2  ;;  %v545_v18 = vsel %vm2548_vm2, %v501_v14, %v529_v62 }
 0x1d7   : > { %v546_v47 = vsel %vm433_vm12, %v544_v16, %v534_v49  ;;  %v547_v19 = vsel %vm433_vm12, %v545_v18, %v535_v50  ;;  %vm2551_vm15 = vcmask 1044480   ;;  %vm2541_vm2 = vcmask 80896  }
 0x1d8   : > { %v548_v48 = vsel %vm427_vm13, %v546_v47, %v540_v15  ;;  %v549_v58 = vsel %vm427_vm13, %v547_v19, %v541_v17  ;;  %vm2552_vm11 = vmmov %vm2551_vm15  ;;  %v1431_v19 = vld [vmem:[%s2520_s1 + $0x10] sm:$0xf] }
 0x1d9   : > { %v554_v5 = vpack.c.bf16 %v524_v54, %v548_v48  ;;  %v555_v6 = vpack.c.bf16 %v525_v55, %v549_v58  ;;  %v559_v25 = vpop.permute.xlu0 %558  ;;  %v680_v58 = vrot.slane %v2058_v20, 2  ;;  %v1436_v20 = vld [vmem:[%s2521_s2 + $0x30] sm:$0xff] }
 0x1db   : > { %v566_v21 = vsel %vm2551_vm15, %v554_v5, 0  ;;  %v569_v22 = vsel %vm2552_vm11, %v555_v6, 0  ;;  %vm2539_vm15 = vcmask 48128   ;;  %v681_v5 = vrot.slane %v2060_v59, 2 }
 0x1dc   : > { %578 = vmatpush.bf16.msra.mxu2 %v566_v21  ;;  %591 = vmatpush.bf16.msra.mxu3 %v569_v22  ;;  %vm2555_vm11 = vcmp.lt.s32.totalorder %v1890_v23, 125 }
 0x1df   : > { %1429 = vmatmul.msk.bf16.vlgmr.msra.gmra.mxu2 %vm2541_vm2, %v1427_v24  ;;  %1430 = vmatmul.msk.bf16.vlgmr.msra.gmra.mxu3 %vm2541_vm2, %v1427_v24  ;;  %vm2565_vm2 = vcmp.lt.s32.totalorder %v1929_v46, 128 }
 0x262   : > { %v580_v26 = vpop.f32.mrf.mxu2  ;;  %v593_v27 = vpop.f32.mrf.mxu3 }
 0x263   : > { %v581_v30 = vadd.f32 %v580_v26, %v559_v25  ;;  %v594_v31 = vadd.f32 %v593_v27, %v559_v25 }
 0x265   : > { %v597_v36 = vmax.f32 %v581_v30, 0.0  ;;  %v598_v37 = vmax.f32 %v594_v31, 0.0 }
 0x267   : > { %v1601_v38 = vpack.i.bf16 %v598_v37, %v597_v36  ;;  %v617_v2 = vrot.slane %v597_v36, 6  ;;  %v618_v3 = vrot.slane %v598_v37, 6 }
 0x269   : > { %1602 = vrot.lane.b32.xlu2 %v1601_v38, %s1807_s8  ;;  %1597 = vrot.lane.b32.xlu1 %v1601_v38, %s1803_s4 }
 0x26a   : > { %v582_v39 = vpop.f32.mrf.mxu2  ;;  %v595_v40 = vpop.f32.mrf.mxu3 }
 0x271   : > { %639 = vperm.xlu1 %1574, %v1432_v41  }
 0x2c3   : > { %v1603_v42 = vpop.permute.xlu2 %1602 }
 0x2c4   : > { %v1605_v43 = vunpack.i.h.bf16 %v1603_v42  ;;  %v1604_v44 = vunpack.i.l.bf16 %v1603_v42 }
 0x2c6   : > { %v603_v49 = vsel %vm2543_vm14, %v1604_v44, %v1605_v43  ;;  %v604_v50 = vsel %vm2543_vm14, %v1605_v43, %v1604_v44 }
 0x2c7   : > { %v605_v62 = vsel %vm216_vm10, %v604_v50, 0.0  ;;  %v606_v1 = vsel %vm217_vm4, %v603_v49, 0.0 }
 0x2c8   : > { %v627_v10 = vsel %vm2553_vm1, %v605_v62, %v617_v2  ;;  %v628_v11 = vsel %vm2554_vm8, %v606_v1, %v618_v3  ;;  %vm2556_vm1 = vmmov %vm2555_vm11  ;;  %vm2557_vm8 = vcmp.lt.s32.totalorder %v1890_v23, 124 }
 0x2db   : > { %v1598_v51 = vpop.permute.xlu1 %1597 }
 0x2dc   : > { %v1600_v52 = vunpack.i.h.bf16 %v1598_v51  ;;  %v1599_v53 = vunpack.i.l.bf16 %v1598_v51 }
 0x2de   : > { %v611_v60 = vsel %vm318_vm7, %v1599_v53, %v1600_v52  ;;  %v612_v61 = vsel %vm318_vm7, %v1600_v52, %v1599_v53 }
 0x2df   : > { %v613_v4 = vsel %vm226_vm6, %v611_v60, 0.0  ;;  %v614_v7 = vsel %vm227_vm5, %v612_v61, 0.0 }
 0x2e0   : > { %v623_v8 = vrot.slane %v613_v4, 4  ;;  %v624_v9 = vrot.slane %v614_v7, 4 }
 0x2e2   : > { %v629_v14 = vsel %vm433_vm12, %v627_v10, %v623_v8  ;;  %v630_v15 = vsel %vm433_vm12, %v628_v11, %v624_v9 }
 0x2e3   : > { %v635_v16 = vpack.c.bf16 %v629_v14, %v629_v14  ;;  %v636_v17 = vpack.c.bf16 %v630_v15, %v630_v15  ;;  %v640_v54 = vpop.permute.xlu1 %639 }
 0x2e5   : > { %v647_v18 = vsel %vm2540_vm9, %v635_v16, 0  ;;  %v650_v47 = vsel %vm2540_vm9, %v636_v17, 0  ;;  %vm2559_vm9 = vcmp.ge.s32.totalorder %v1899_v29, 0 }
 0x2e6   : > { %659 = vmatpush.bf16.msrb.mxu2 %v647_v18  ;;  %672 = vmatpush.bf16.msrb.mxu3 %v650_v47 }
 0x2e9   : > { %1433 = vmatmul.msk.bf16.vlgmr.msrb.gmra.mxu2 %vm2539_vm15, %v1431_v19  ;;  %1434 = vmatmul.msk.bf16.vlgmr.msrb.gmra.mxu3 %vm2539_vm15, %v1431_v19  ;;  %vm2558_vm15 = vmmov %vm2557_vm8 }
 0x36c   : > { %v661_v48 = vpop.f32.mrf.mxu2  ;;  %v674_v55 = vpop.f32.mrf.mxu3 }
 0x36d   : > { %v662_v6 = vadd.f32 %v661_v48, %v640_v54  ;;  %v675_v21 = vadd.f32 %v674_v55, %v640_v54 }
 0x36f   : > { %v684_v22 = vadd.f32 %v680_v58, %v662_v6  ;;  %v685_v24 = vadd.f32 %v681_v5, %v675_v21 }
 0x371   : > { %v686_v25 = vmax.f32 %v684_v22, 0.0  ;;  %v687_v26 = vmax.f32 %v685_v24, 0.0 }
 0x373   : > { %v1616_v27 = vpack.i.bf16 %v687_v26, %v686_v25  ;;  %v758_v19 = vrot.slane %v686_v25, 2  ;;  %v759_v54 = vrot.slane %v687_v26, 2 }
 0x374   : > { %v663_v30 = vpop.f32.mrf.mxu2  ;;  %v676_v31 = vpop.f32.mrf.mxu3 }
 0x375   : > { %1617 = vrot.lane.b32.xlu1 %v1616_v27, %s1807_s8  ;;  %1612 = vrot.lane.b32.xlu0 %v1616_v27, %s1802_s30 }
 0x376   : > { %1607 = vrot.lane.b32.xlu2 %v1616_v27, %s1801_s29 }
 0x37d   : > { %1632 = vrot.lane.b32.xlu1 %v1616_v27, %s1803_s4  ;;  %1627 = vrot.lane.b32.xlu0 %v1616_v27, %s1806_s7 }
 0x37e   : > { %1622 = vrot.lane.b32.xlu2 %v1616_v27, %s1804_s5 }
 0x385   : > { %800 = vperm.xlu0 %1595, %v1436_v20  }
 0x386   : > { %1637 = vrot.lane.b32.xlu2 %v1616_v27, %s1805_s6 }
 0x3d0   : > { %v1608_v59 = vpop.permute.xlu2 %1607 }
 0x3d1   : > { %v1610_v38 = vunpack.i.h.bf16 %v1608_v59  ;;  %v1609_v39 = vunpack.i.l.bf16 %v1608_v59 }
 0x3d3   : > { %v700_v44 = vsel %vm282_vm0, %v1609_v39, %v1610_v38  ;;  %v701_v49 = vsel %vm282_vm0, %v1610_v38, %v1609_v39 }
 0x3d4   : > { %v702_v4 = vsel %vm2542_vm3, %v701_v49, 0.0  ;;  %v703_v7 = vsel %vm2559_vm9, %v700_v44, 0.0  ;;  %vm2564_vm9 = vcmp.lt.s32.totalorder %v1926_v45, 128 }
 0x3d5   : > { %v746_v18 = vrot.slane %v702_v4, 6  ;;  %v747_v47 = vrot.slane %v703_v7, 6 }
 0x3d8   : > { %v1623_v36 = vpop.permute.xlu2 %1622 }
 0x3d9   : > { %v1625_v40 = vunpack.i.h.bf16 %v1623_v36  ;;  %v1624_v41 = vunpack.i.l.bf16 %v1623_v36 }
 0x3db   : > { %v732_v62 = vsel %vm2555_vm11, %v1624_v41, %v1625_v40  ;;  %v733_v1 = vsel %vm2556_vm1, %v1625_v40, %v1624_v41  ;;  %vm2560_vm11 = vcmp.lt.s32.totalorder %v1890_v23, 126 }
 0x3dc   : > { %vm2561_vm1 = vmmov %vm2560_vm11 }
 0x3e0   : > { %v1638_v37 = vpop.permute.xlu2 %1637 }
 0x3e1   : > { %v1640_v42 = vunpack.i.h.bf16 %v1638_v37  ;;  %v1639_v43 = vunpack.i.l.bf16 %v1638_v37 }
 0x3e3   : > { %v740_v2 = vsel %vm2557_vm8, %v1639_v43, %v1640_v42  ;;  %v741_v3 = vsel %vm2558_vm15, %v1640_v42, %v1639_v43  ;;  %vm2562_vm15 = vcmp.lt.s32.totalorder %v1910_v34, 128  ;;  %vm2563_vm8 = vcmp.lt.s32.totalorder %v1913_v35, 128 }
 0x3e4   : > { %v734_v14 = vsel %vm2562_vm15, %v732_v62, 0.0  ;;  %v735_v15 = vsel %vm2563_vm8, %v733_v1, 0.0  ;;  %v742_v16 = vsel %vm2564_vm9, %v740_v2, 0.0  ;;  %v743_v17 = vsel %vm2565_vm2, %v741_v3, 0.0 }
 0x3e5   : > { %v770_v6 = vrot.slane %v734_v14, 4  ;;  %v771_v21 = vrot.slane %v735_v15, 4  ;;  %v776_v27 = vrot.slane %v742_v16, 2  ;;  %v777_v30 = vrot.slane %v743_v17, 2 }
 0x3e6   : > { %vm2568_vm2 = vcmp.lt.s32.totalorder %v1890_v23, 3  ;;  %vm2570_vm8 = vcmp.ge.s32.totalorder %v1957_v56, 0  ;;  %vm2571_vm9 = vcmp.ge.s32.totalorder %v1960_v57, 0 }
 0x3e7   : > { %v1618_v50 = vpop.permute.xlu1 %1617  ;;  %v1613_v51 = vpop.permute.xlu0 %1612  ;;  %vm2569_vm15 = vmmov %vm2568_vm2 }
 0x3e8   : > { %v1620_v52 = vunpack.i.h.bf16 %v1618_v50  ;;  %v1619_v53 = vunpack.i.l.bf16 %v1618_v50  ;;  %v1615_v60 = vunpack.i.h.bf16 %v1613_v51  ;;  %v1614_v61 = vunpack.i.l.bf16 %v1613_v51 }
 0x3ea   : > { %v708_v8 = vsel %vm2543_vm14, %v1619_v53, %v1620_v52  ;;  %v709_v9 = vsel %vm2543_vm14, %v1620_v52, %v1619_v53  ;;  %v724_v10 = vsel %vm2560_vm11, %v1614_v61, %v1615_v60  ;;  %v725_v11 = vsel %vm2561_vm1, %v1615_v60, %v1614_v61 }
 0x3eb   : > { %v710_v48 = vsel %vm216_vm10, %v709_v9, 0.0  ;;  %v711_v55 = vsel %vm217_vm4, %v708_v8, 0.0  ;;  %vm2566_vm11 = vcmp.lt.s32.totalorder %v1902_v32, 128  ;;  %vm2567_vm1 = vcmp.lt.s32.totalorder %v1906_v33, 128 }
 0x3ec   : > { %v726_v58 = vsel %vm2566_vm11, %v724_v10, 0.0  ;;  %v727_v5 = vsel %vm2567_vm1, %v725_v11, 0.0  ;;  %v752_v59 = vrot.slane %v710_v48, 4  ;;  %v753_v36 = vrot.slane %v711_v55, 4  ;;  %v1435_v11 = vld [vmem:[%s2520_s1 + $0x18] sm:$0xf] }
 0x3ed   : > { %v764_v37 = vrot.slane %v726_v58, 6  ;;  %v765_v38 = vrot.slane %v727_v5, 6  ;;  %vm2572_vm11 = vcmask 1041408   ;;  %v1440_v58 = vld [vmem:[%s2521_s2 + $0x40] sm:$0xff]  ;;  %v1444_v5 = vld [vmem:[%s2521_s2 + $0x50] sm:$0xff] }
 0x3ee   : > { %vm2573_vm1 = vmmov %vm2572_vm11 }
 0x3ef   : > { %v1633_v22 = vpop.permute.xlu1 %1632  ;;  %v1628_v24 = vpop.permute.xlu0 %1627  ;;  %vm2575_vm3 = vmmov %vm2573_vm1 }
 0x3f0   : > { %v1635_v25 = vunpack.i.h.bf16 %v1633_v22  ;;  %v1634_v26 = vunpack.i.l.bf16 %v1633_v22  ;;  %v1630_v31 = vunpack.i.h.bf16 %v1628_v24  ;;  %v1629_v20 = vunpack.i.l.bf16 %v1628_v24 }
 0x3f2   : > { %v716_v39 = vsel %vm318_vm7, %v1634_v26, %v1635_v25  ;;  %v717_v40 = vsel %vm318_vm7, %v1635_v25, %v1634_v26  ;;  %v692_v41 = vsel %vm2568_vm2, %v1629_v20, %v1630_v31  ;;  %v693_v42 = vsel %vm2569_vm15, %v1630_v31, %v1629_v20  ;;  %vm2574_vm2 = vmmov %vm2573_vm1 }
 0x3f3   : > { %v718_v43 = vsel %vm226_vm6, %v716_v39, 0.0  ;;  %v719_v44 = vsel %vm227_vm5, %v717_v40, 0.0  ;;  %v694_v49 = vsel %vm2570_vm8, %v693_v42, 0.0  ;;  %v695_v50 = vsel %vm2571_vm9, %v692_v41, 0.0  ;;  %vm2578_vm9 = vmmov %vm2573_vm1 }
 0x3f4   : > { %v780_v51 = vsel %vm2572_vm11, %v694_v49, %v746_v18  ;;  %v786_v52 = vsel %vm2573_vm1, %v718_v43, %v764_v37  ;;  %v781_v53 = vsel %vm2574_vm2, %v695_v50, %v747_v47  ;;  %v787_v60 = vsel %vm2575_vm3, %v719_v44, %v765_v38  ;;  %vm2579_vm11 = vmmov %vm2573_vm1 }
 0x3f5   : > { %v782_v61 = vsel %vm433_vm12, %v780_v51, %v752_v59  ;;  %v788_v62 = vsel %vm433_vm12, %v786_v52, %v770_v6  ;;  %v783_v1 = vsel %vm433_vm12, %v781_v53, %v753_v36  ;;  %v789_v2 = vsel %vm433_vm12, %v787_v60, %v771_v21 }
 0x3f6   : > { %v784_v3 = vsel %vm427_vm13, %v782_v61, %v758_v19  ;;  %v790_v4 = vsel %vm427_vm13, %v788_v62, %v776_v27  ;;  %v785_v7 = vsel %vm427_vm13, %v783_v1, %v759_v54  ;;  %v791_v8 = vsel %vm427_vm13, %v789_v2, %v777_v30 }
 0x3f7   : > { %v796_v9 = vpack.c.bf16 %v790_v4, %v784_v3  ;;  %v797_v10 = vpack.c.bf16 %v791_v8, %v785_v7  ;;  %vm803_vm3 = vcmask 130048   ;;  %v801_v14 = vpop.permute.xlu0 %800  ;;  %vm2576_vm15 = vcmp.ge.s32.totalorder %v1896_v28, 0 }
 0x3f8   : > { %vm2577_vm8 = vcmp.ge.s32.totalorder %v1899_v29, 0  ;;  %vm2580_vm1 = vcmp.lt.s32.totalorder %v1890_v23, 126 }
 0x3f9   : > { %814 = vmatpush.bf16.msrb.mxu0 %v796_v9  ;;  %827 = vmatpush.bf16.msrb.mxu1 %v797_v10  ;;  %vm2581_vm2 = vmmov %vm2580_vm1 }
 0x3fc   : > { %1437 = vmatmul.msk.bf16.vlgmr.msrb.gmra.mxu0 %vm803_vm3, %v1435_v11  ;;  %1438 = vmatmul.msk.bf16.vlgmr.msrb.gmra.mxu1 %vm803_vm3, %v1435_v11 }
 0x479   : > { %v816_v15 = vpop.f32.mrf.mxu0  ;;  %v829_v16 = vpop.f32.mrf.mxu1 }
 0x47a   : > { %v2233_v17 = vadd.f32 %v816_v15, %v801_v14  ;;  %v2235_v18 = vadd.f32 %v829_v16, %v801_v14 }
 0x47c   : > { %v833_v47 = vmax.f32 %v2233_v17, 0.0  ;;  %v834_v19 = vmax.f32 %v2235_v18, 0.0 }
 0x47e   : > { %v1651_v54 = vpack.i.bf16 %v834_v19, %v833_v47  ;;  %v875_v50 = vrot.slane %v833_v47, 4  ;;  %v876_v51 = vrot.slane %v834_v19, 4 }
 0x480   : > { %1652 = vrot.lane.b32.xlu0 %v1651_v54, %s1803_s4  ;;  %1647 = vrot.lane.b32.xlu2 %v1651_v54, %s1801_s29 }
 0x481   : > { %1642 = vrot.lane.b32.xlu1 %v1651_v54, %s1807_s8  ;;  %v818_v48 = vpop.f32.mrf.mxu0  ;;  %v831_v55 = vpop.f32.mrf.mxu1 }
 0x482   : > { %v1439_v55 = vld [vmem:[%s2520_s1 + $0x20] sm:$0xf] }
 0x488   : > { %899 = vperm.xlu2 %1661, %v1440_v58  }
 0x489   : > { %1657 = vrot.lane.b32.xlu1 %v1651_v54, %s1802_s30 }
 0x490   : > { %979 = vperm.xlu2 %1661, %v1444_v5  }
 0x4da   : > { %v1648_v6 = vpop.permute.xlu2 %1647 }
 0x4db   : > { %v1650_v21 = vunpack.i.h.bf16 %v1648_v6  ;;  %v1649_v22 = vunpack.i.l.bf16 %v1648_v6 }
 0x4dd   : > { %v839_v20 = vsel %vm282_vm0, %v1649_v22, %v1650_v21  ;;  %v840_v59 = vsel %vm282_vm0, %v1650_v21, %v1649_v22 }
 0x4de   : > { %v841_v44 = vsel %vm2576_vm15, %v840_v59, 0.0  ;;  %v842_v49 = vsel %vm2577_vm8, %v839_v20, 0.0  ;;  %vm2582_vm15 = vcmp.lt.s32.totalorder %v1902_v32, 128  ;;  %vm2583_vm8 = vcmp.lt.s32.totalorder %v1906_v33, 128 }
 0x4e2   : > { %v900_v58 = vpop.permute.xlu2 %899 }
 0x4f2   : > { %v1653_v24 = vpop.permute.xlu0 %1652 }
 0x4f3   : > { %v1655_v27 = vunpack.i.h.bf16 %v1653_v24  ;;  %v1654_v30 = vunpack.i.l.bf16 %v1653_v24  ;;  %v1643_v25 = vpop.permute.xlu1 %1642 }
 0x4f4   : > { %v1645_v26 = vunpack.i.h.bf16 %v1643_v25  ;;  %v1644_v31 = vunpack.i.l.bf16 %v1643_v25 }
 0x4f5   : > { %v855_v38 = vsel %vm318_vm7, %v1654_v30, %v1655_v27  ;;  %v856_v39 = vsel %vm318_vm7, %v1655_v27, %v1654_v30 }
 0x4f6   : > { %v847_v36 = vsel %vm2543_vm14, %v1644_v31, %v1645_v26  ;;  %v848_v37 = vsel %vm2543_vm14, %v1645_v26, %v1644_v31  ;;  %v857_v52 = vsel %vm226_vm6, %v855_v38, 0.0  ;;  %v858_v53 = vsel %vm227_vm5, %v856_v39, 0.0 }
 0x4f7   : > { %v849_v40 = vsel %vm216_vm10, %v848_v37, 0.0  ;;  %v850_v41 = vsel %vm217_vm4, %v847_v36, 0.0  ;;  %v881_v7 = vrot.slane %v857_v52, 2  ;;  %v882_v8 = vrot.slane %v858_v53, 2 }
 0x4f8   : > { %v869_v42 = vrot.slane %v849_v40, 6  ;;  %v870_v43 = vrot.slane %v850_v41, 6 }
 0x4fa   : > { %v885_v60 = vsel %vm2578_vm9, %v841_v44, %v869_v42  ;;  %v886_v61 = vsel %vm2579_vm11, %v842_v49, %v870_v43  ;;  %vm2584_vm9 = vcmask 1044480  }
 0x4fb   : > { %v1658_v62 = vpop.permute.xlu1 %1657  ;;  %v887_v3 = vsel %vm433_vm12, %v885_v60, %v875_v50  ;;  %v888_v4 = vsel %vm433_vm12, %v886_v61, %v876_v51  ;;  %vm2585_vm11 = vmmov %vm2584_vm9 }
 0x4fc   : > { %v1660_v1 = vunpack.i.h.bf16 %v1658_v62  ;;  %v1659_v2 = vunpack.i.l.bf16 %v1658_v62  ;;  %v889_v14 = vsel %vm427_vm13, %v887_v3, %v881_v7  ;;  %v890_v16 = vsel %vm427_vm13, %v888_v4, %v882_v8 }
 0x4fe   : > { %v863_v9 = vsel %vm2580_vm1, %v1659_v2, %v1660_v1  ;;  %v864_v10 = vsel %vm2581_vm2, %v1660_v1, %v1659_v2  ;;  %vm2586_vm1 = vcmask 80896  }
 0x4ff   : > { %v865_v11 = vsel %vm2582_vm15, %v863_v9, 0.0  ;;  %v866_v15 = vsel %vm2583_vm8, %v864_v10, 0.0  ;;  %vm2587_vm2 = vmmov %vm2586_vm1  ;;  %vm2588_vm15 = vcmask 1041408   ;;  %v1443_v9 = vld [vmem:[%s2520_s1 + $0x28] sm:$0xf]  ;;  %v980_v10 = vpop.permute.xlu2 %979 }
 0x500   : > { %v895_v47 = vpack.c.bf16 %v865_v11, %v889_v14  ;;  %v896_v19 = vpack.c.bf16 %v866_v15, %v890_v16  ;;  %vm2589_vm8 = vmmov %vm2588_vm15  ;;  %v1019_v15 = vrot.slane %v2233_v17, 2  ;;  %v1020_v16 = vrot.slane %v2235_v18, 2  ;;  %v1449_v17 = vld [vmem:[%s2521_s2 + $0x60] sm:$0xff] }
 0x502   : > { %v906_v54 = vsel %vm2584_vm9, %v895_v47, 0  ;;  %v909_v48 = vsel %vm2585_vm11, %v896_v19, 0  ;;  %vm2590_vm9 = vcmask 1042432  }
 0x503   : > { %918 = vmatpush.bf16.msra.mxu2 %v906_v54  ;;  %931 = vmatpush.bf16.msra.mxu3 %v909_v48  ;;  %vm2591_vm11 = vmmov %vm2590_vm9 }
 0x506   : > { %1441 = vmatmul.msk.bf16.vlgmr.msra.gmra.mxu2 %vm2586_vm1, %v1439_v55  ;;  %1442 = vmatmul.msk.bf16.vlgmr.msra.gmra.mxu3 %vm2587_vm2, %v1439_v55  ;;  %vm2592_vm1 = vcmask 48128  }
 0x507   : > { %vm2593_vm2 = vmmov %vm2592_vm1 }
 0x589   : > { %v920_v5 = vpop.f32.mrf.mxu2  ;;  %v933_v6 = vpop.f32.mrf.mxu3 }
 0x58a   : > { %v921_v21 = vadd.f32 %v920_v5, %v900_v58  ;;  %v934_v22 = vadd.f32 %v933_v6, %v900_v58 }
 0x58c   : > { %v937_v24 = vmax.f32 %v921_v21, 0.0  ;;  %v938_v27 = vmax.f32 %v934_v22, 0.0 }
 0x58e   : > { %v1667_v30 = vpack.i.bf16 %v938_v27, %v937_v24  ;;  %v957_v39 = vrot.slane %v937_v24, 6  ;;  %v958_v40 = vrot.slane %v938_v27, 6 }
 0x590   : > { %1668 = vrot.lane.b32.xlu1 %v1667_v30, %s1807_s8  ;;  %1663 = vrot.lane.b32.xlu0 %v1667_v30, %s1803_s4 }
 0x591   : > { %v922_v25 = vpop.f32.mrf.mxu2  ;;  %v935_v26 = vpop.f32.mrf.mxu3 }
 0x602   : > { %v1669_v31 = vpop.permute.xlu1 %1668  ;;  %v1664_v20 = vpop.permute.xlu0 %1663 }
 0x603   : > { %v1671_v59 = vunpack.i.h.bf16 %v1669_v31  ;;  %v1670_v36 = vunpack.i.l.bf16 %v1669_v31  ;;  %v1666_v37 = vunpack.i.h.bf16 %v1664_v20  ;;  %v1665_v38 = vunpack.i.l.bf16 %v1664_v20 }
 0x605   : > { %v943_v41 = vsel %vm2543_vm14, %v1670_v36, %v1671_v59  ;;  %v944_v42 = vsel %vm2543_vm14, %v1671_v59, %v1670_v36  ;;  %v951_v43 = vsel %vm318_vm7, %v1665_v38, %v1666_v37  ;;  %v952_v44 = vsel %vm318_vm7, %v1666_v37, %v1665_v38 }
 0x606   : > { %v945_v49 = vsel %vm216_vm10, %v944_v42, 0.0  ;;  %v946_v50 = vsel %vm217_vm4, %v943_v41, 0.0  ;;  %v953_v51 = vsel %vm226_vm6, %v951_v43, 0.0  ;;  %v954_v52 = vsel %vm227_vm5, %v952_v44, 0.0 }
 0x607   : > { %v963_v53 = vrot.slane %v953_v51, 4  ;;  %v964_v60 = vrot.slane %v954_v52, 4  ;;  %v967_v61 = vsel %vm2588_vm15, %v945_v49, %v957_v39  ;;  %v968_v62 = vsel %vm2589_vm8, %v946_v50, %v958_v40 }
 0x608   : > { %vm2594_vm15 = vcmp.lt.s32.totalorder %v1890_v23, 126 }
 0x609   : > { %v969_v1 = vsel %vm433_vm12, %v967_v61, %v963_v53  ;;  %v970_v2 = vsel %vm433_vm12, %v968_v62, %v964_v60  ;;  %vm2595_vm8 = vmmov %vm2594_vm15 }
 0x60a   : > { %v975_v3 = vpack.c.bf16 %v969_v1, %v969_v1  ;;  %v976_v4 = vpack.c.bf16 %v970_v2, %v970_v2 }
 0x60c   : > { %v986_v7 = vsel %vm2590_vm9, %v975_v3, 0  ;;  %v989_v8 = vsel %vm2591_vm11, %v976_v4, 0  ;;  %vm2596_vm9 = vcmp.lt.s32.totalorder %v1890_v23, 3 }
 0x60d   : > { %998 = vmatpush.bf16.msra.mxu0 %v986_v7  ;;  %1011 = vmatpush.bf16.msra.mxu1 %v989_v8  ;;  %vm2597_vm11 = vmmov %vm2596_vm9 }
 0x610   : > { %1445 = vmatmul.msk.bf16.vlgmr.msra.gmra.mxu0 %vm2592_vm1, %v1443_v9  ;;  %1446 = vmatmul.msk.bf16.vlgmr.msra.gmra.mxu1 %vm2593_vm2, %v1443_v9  ;;  %vm2598_vm1 = vcmp.ge.s32.totalorder %v1896_v28, 0  ;;  %vm2599_vm2 = vcmp.ge.s32.totalorder %v1899_v29, 0 }
 0x68d   : > { %v1000_v11 = vpop.f32.mrf.mxu0  ;;  %v1013_v14 = vpop.f32.mrf.mxu1 }
 0x68e   : > { %v1001_v47 = vadd.f32 %v1000_v11, %v980_v10  ;;  %v1014_v19 = vadd.f32 %v1013_v14, %v980_v10 }
 0x690   : > { %v1023_v54 = vadd.f32 %v1019_v15, %v1001_v47  ;;  %v1024_v48 = vadd.f32 %v1020_v16, %v1014_v19 }
 0x692   : > { %v1025_v55 = vmax.f32 %v1023_v54, 0.0  ;;  %v1026_v58 = vmax.f32 %v1024_v48, 0.0 }
 0x694   : > { %v1682_v5 = vpack.i.bf16 %v1026_v58, %v1025_v55  ;;  %v1097_v8 = vrot.slane %v1025_v55, 2  ;;  %v1098_v9 = vrot.slane %v1026_v58, 2 }
 0x695   : > { %v1002_v6 = vpop.f32.mrf.mxu0  ;;  %v1015_v21 = vpop.f32.mrf.mxu1 }
 0x696   : > { %1683 = vrot.lane.b32.xlu2 %v1682_v5, %s1807_s8  ;;  %1678 = vrot.lane.b32.xlu1 %v1682_v5, %s1802_s30 }
 0x697   : > { %1673 = vrot.lane.b32.xlu0 %v1682_v5, %s1801_s29 }
 0x69e   : > { %1698 = vrot.lane.b32.xlu2 %v1682_v5, %s1803_s4  ;;  %1693 = vrot.lane.b32.xlu1 %v1682_v5, %s1806_s7  ;;  %s1358_s7 = sshll.u32 %s1354_s17, 4  ;;  %s1359_s7 = int_to_ptr.hbm [resolvable:$true] %s1358_s7 }
 0x69f   : > { %1688 = vrot.lane.b32.xlu0 %v1682_v5, %s1804_s5  ;;  %s163_s5 = scalar_lea.vmem [#allocation2], %s1422_s28  ;;  %s1751_s19 = sshra.s32 %s1359_s7, 4  ;;  %s1752_s19 = int_to_ptr.hbm [resolvable:$true] %s1751_s19 }
 0x6a0   : > { %s1753_s20 = scalar_lea.hbm %s1752_s19, 16  ;;  %p1758_p0 = scmp.lt.s32.totalorder %s1752_s19, %s2522_s3 }
 0x6a1   : > { %p1754_p11 = scmp.ne.s32.totalorder %s1752_s19, %s1753_s20 }
 0x6a3   : > { %p1755_p12 = pnand %p1754_p11, %p1868_p5 }
 0x6a5   : > { %p1756_p13 = pneg %p1755_p12 }
 0x6a6   : > { %1141 = vperm.xlu1 %1574, %v1449_v17  }
 0x6a7   : > { %1703 = vrot.lane.b32.xlu0 %v1682_v5, %s1805_s6  ;;  %s1356_s6 = sshll.u32 %s163_s5, 4  ;;  %s1357_s6 = int_to_ptr.vmem [resolvable:$true] %s1356_s6 }
 0x6f0   : > { %v1684_v18 = vpop.permute.xlu2 %1683 }
 0x6f1   : > { %v1686_v25 = vunpack.i.h.bf16 %v1684_v18  ;;  %v1685_v26 = vunpack.i.l.bf16 %v1684_v18 }
 0x6f3   : > { %v1047_v44 = vsel %vm2543_vm14, %v1685_v26, %v1686_v25  ;;  %v1048_v49 = vsel %vm2543_vm14, %v1686_v25, %v1685_v26  ;;  %vm2600_vm14 = vcmp.lt.s32.totalorder %v1890_v23, 125 }
 0x6f4   : > { %v1049_v10 = vsel %vm216_vm10, %v1048_v49, 0.0  ;;  %v1050_v11 = vsel %vm217_vm4, %v1047_v44, 0.0 }
 0x6f5   : > { %v1092_v18 = vrot.slane %v1050_v11, 4 }
 0x6f8   : > { %v1699_v36 = vpop.permute.xlu2 %1698 }
 0x6f9   : > { %v1701_v52 = vunpack.i.h.bf16 %v1699_v36  ;;  %v1700_v53 = vunpack.i.l.bf16 %v1699_v36 }
 0x6fb   : > { %v1055_v48 = vsel %vm318_vm7, %v1700_v53, %v1701_v52  ;;  %v1056_v55 = vsel %vm318_vm7, %v1701_v52, %v1700_v53 }
 0x708   : > { %v1679_v22 = vpop.permute.xlu1 %1678 }
 0x709   : > { %v1674_v24 = vpop.permute.xlu0 %1673  ;;  %v1681_v31 = vunpack.i.h.bf16 %v1679_v22  ;;  %v1680_v20 = vunpack.i.l.bf16 %v1679_v22 }
 0x70a   : > { %v1676_v27 = vunpack.i.h.bf16 %v1674_v24  ;;  %v1675_v30 = vunpack.i.l.bf16 %v1674_v24  ;;  %v1057_v24 = vsel %vm226_vm6, %v1055_v48, 0.0 }
 0x70b   : > { %v1063_v50 = vsel %vm2594_vm15, %v1680_v20, %v1681_v31  ;;  %v1064_v51 = vsel %vm2595_vm8, %v1681_v31, %v1680_v20  ;;  %vm2601_vm15 = vmmov %vm2600_vm14  ;;  %vm2602_vm8 = vcmp.lt.s32.totalorder %v1902_v32, 128 }
 0x70c   : > { %v1039_v40 = vsel %vm282_vm0, %v1675_v30, %v1676_v27  ;;  %v1040_v41 = vsel %vm282_vm0, %v1676_v27, %v1675_v30  ;;  %v1065_v4 = vsel %vm2602_vm8, %v1063_v50, 0.0  ;;  %v1058_v27 = vsel %vm227_vm5, %v1056_v55, 0.0  ;;  %v1489_v50 = vld [vmem:[%s2520_s1 + $0x30] sm:$0xff] }
 0x70d   : > { %v1041_v62 = vsel %vm2598_vm1, %v1040_v41, 0.0  ;;  %v1042_v1 = vsel %vm2599_vm2, %v1039_v40, 0.0  ;;  %vm2606_vm1 = vcmp.lt.s32.totalorder %v1910_v34, 128  ;;  %vm2607_vm2 = vcmp.lt.s32.totalorder %v1913_v35, 128 }
 0x70e   : > { %v1085_v16 = vrot.slane %v1041_v62, 6  ;;  %v1086_v47 = vrot.slane %v1042_v1, 6  ;;  %v1103_v58 = vrot.slane %v1065_v4, 6  ;;  %v1091_v34 = vrot.slane %v1049_v10, 4  ;;  %v1450_v4 = vld [vmem:[%s2521_s2 + $0x68] sm:$0xff] }
 0x710   : > { %v1694_v59 = vpop.permute.xlu1 %1693 }
 0x711   : > { %v1696_v37 = vunpack.i.h.bf16 %v1694_v59  ;;  %v1695_v38 = vunpack.i.l.bf16 %v1694_v59  ;;  %v1689_v39 = vpop.permute.xlu0 %1688 }
 0x712   : > { %v1691_v42 = vunpack.i.h.bf16 %v1689_v39  ;;  %v1690_v43 = vunpack.i.l.bf16 %v1689_v39 }
 0x713   : > { %v1031_v60 = vsel %vm2596_vm9, %v1695_v38, %v1696_v37  ;;  %v1032_v61 = vsel %vm2597_vm11, %v1696_v37, %v1695_v38  ;;  %vm2603_vm9 = vcmp.lt.s32.totalorder %v1906_v33, 128  ;;  %vm2604_vm11 = vcmp.ge.s32.totalorder %v1957_v56, 0 }
 0x714   : > { %v1071_v2 = vsel %vm2600_vm14, %v1690_v43, %v1691_v42  ;;  %v1072_v3 = vsel %vm2601_vm15, %v1691_v42, %v1690_v43  ;;  %v1066_v7 = vsel %vm2603_vm9, %v1064_v51, 0.0  ;;  %v1033_v14 = vsel %vm2604_vm11, %v1032_v61, 0.0 }
 0x715   : > { %vm2605_vm14 = vcmp.ge.s32.totalorder %v1960_v57, 0  ;;  %v1073_v19 = vsel %vm2606_vm1, %v1071_v2, 0.0  ;;  %v1074_v54 = vsel %vm2607_vm2, %v1072_v3, 0.0  ;;  %v1104_v56 = vrot.slane %v1066_v7, 6  ;;  %v1458_v3 = vld [vmem:[%s2521_s2 + $0x70] sm:$0xff] }
 0x716   : > { %v1034_v15 = vsel %vm2605_vm14, %v1031_v60, 0.0  ;;  %vm2608_vm15 = vcmask 1041408   ;;  %v1109_v22 = vrot.slane %v1073_v19, 4  ;;  %v1110_v35 = vrot.slane %v1074_v54, 4 }
 0x717   : > { %v1119_v57 = vsel %vm2608_vm15, %v1033_v14, %v1085_v16  ;;  %vm2609_vm8 = vmmov %vm2608_vm15  ;;  %vm2610_vm9 = vcmp.lt.s32.totalorder %v1890_v23, 124  ;;  %vm2612_vm14 = vcmp.lt.s32.totalorder %v1926_v45, 128  ;;  %vm2613_vm1 = vcmp.lt.s32.totalorder %v1929_v46, 128 }
 0x718   : > { %v1120_v6 = vsel %vm2609_vm8, %v1034_v15, %v1086_v47  ;;  %vm2611_vm11 = vmmov %vm2610_vm9  ;;  %v1121_v20 = vsel %vm433_vm12, %v1119_v57, %v1091_v34  ;;  %v1142_v51 = vpop.permute.xlu1 %1141 }
 0x719   : > { %v1704_v5 = vpop.permute.xlu0 %1703  ;;  %v1122_v59 = vsel %vm433_vm12, %v1120_v6, %v1092_v18  ;;  %vm2614_vm2 = vmmov %vm2609_vm8  ;;  %v1123_v45 = vsel %vm427_vm13, %v1121_v20, %v1097_v8  ;;  %vm2618_vm8 = vcmp.lt.s32.totalorder %v1902_v32, 128 }
 0x71a   : > { %v1706_v21 = vunpack.i.h.bf16 %v1704_v5  ;;  %v1705_v17 = vunpack.i.l.bf16 %v1704_v5  ;;  %v1125_v36 = vsel %vm2614_vm2, %v1057_v24, %v1103_v58  ;;  %vm2615_vm15 = vmmov %vm2614_vm2  ;;  %v1124_v46 = vsel %vm427_vm13, %v1122_v59, %v1098_v9 }
 0x71b   : > { %v1126_v37 = vsel %vm2615_vm15, %v1058_v27, %v1104_v56  ;;  %v1127_v40 = vsel %vm433_vm12, %v1125_v36, %v1109_v22  ;;  %vm2620_vm2 = vcmp.ge.s32.totalorder %v1896_v28, 0  ;;  %v1457_v28 = vld [vmem:[%s2520_s1 + $0x38] sm:$0xf] }
 0x71c   : > { %v1079_v30 = vsel %vm2610_vm9, %v1705_v17, %v1706_v21  ;;  %v1080_v25 = vsel %vm2611_vm11, %v1706_v21, %v1705_v17  ;;  %v1128_v41 = vsel %vm433_vm12, %v1126_v37, %v1110_v35  ;;  %vm2619_vm9 = vcmp.lt.s32.totalorder %v1906_v33, 128  ;;  %vm1462_vm15 = vmpackc.low %vm216_vm10, %vm2620_vm2 }
 0x71d   : > { %v1081_v26 = vsel %vm2612_vm14, %v1079_v30, 0.0  ;;  %v1082_v31 = vsel %vm2613_vm1, %v1080_v25, 0.0  ;;  %vm1809_vm11 = vmmov 1  }
 0x71e   : > { %v1115_v38 = vrot.slane %v1081_v26, 2  ;;  %v1116_v39 = vrot.slane %v1082_v31, 2  ;;  %vm1459_vm14 = vmpackc.low %vm226_vm6, %vm1809_vm11 }
 0x71f   : > { %vm1466_vm1 = vmpackc.low %vm227_vm5, %vm1809_vm11 }
 0x720   : > { %v1129_v42 = vsel %vm427_vm13, %v1127_v40, %v1115_v38  ;;  %v1130_v43 = vsel %vm427_vm13, %v1128_v41, %v1116_v39  ;;  %vm2616_vm13 = vcmp.lt.s32.totalorder %v1890_v23, 126  ;;  %v1474_v41 = vld [vmem:[%s2521_s2 + $0x80] sm:$0xff] }
 0x721   : > { %v1137_v44 = vpack.c.bf16 %v1129_v42, %v1123_v45  ;;  %v1138_v49 = vpack.c.bf16 %v1130_v43, %v1124_v46 }
 0x723   : > { %1164 = vmatpush.bf16.msrb.mxu2 %v1137_v44  ;;  %1178 = vmatpush.bf16.msrb.mxu3 %v1138_v49 }
 0x726   : > { %1455 = vmatmul.msk.bf16.vlgmr.msrb.gmra.mxu2 %vm803_vm3, %v1489_v50  ;;  %1456 = vmatmul.msk.bf16.vlgmr.msrb.gmra.mxu3 %vm803_vm3, %v1489_v50  ;;  %vm2617_vm3 = vmmov %vm2616_vm13 }
 0x7a9   : > { %v1166_v52 = vpop.f32.mrf.mxu2  ;;  %v1180_v53 = vpop.f32.mrf.mxu3 }
 0x7aa   : > { %v1167_v60 = vadd.f32 %v1166_v52, %v1142_v51  ;;  %v1181_v61 = vadd.f32 %v1180_v53, %v1142_v51 }
 0x7ac   : > { %v1185_v62 = vmax.f32 %v1167_v60, 0.0  ;;  %v1186_v1 = vmax.f32 %v1181_v61, 0.0 }
 0x7ae   : > { %v1717_v2 = vpack.i.bf16 %v1186_v1, %v1185_v62 }
 0x7b0   : > { %1718 = vrot.lane.b32.xlu1 %v1717_v2, %s1801_s29  ;;  %1713 = vrot.lane.b32.xlu0 %v1717_v2, %s1803_s4 }
 0x7b1   : > { %1708 = vrot.lane.b32.xlu2 %v1717_v2, %s1802_s30  ;;  %v1182_v12 = vpop.f32.mrf.mxu3  ;;  %s1757_s30 = scalar_lea.hbm %s2522_s3, 32 }
 0x7b2   : > { %p1759_p1 = scmp.lt.s32.totalorder %s1757_s30, %s1753_s20 }
 0x7b4   : > { %p1760_p2 = por %p1759_p1, %p1758_p0 }
 0x7b6   : > { %p1761_p3 = pnand %p1760_p2, %p1756_p13 }
 0x7b8   : > { %1231 = vperm.xlu0 %1595, %v1458_v3  }
 0x7b9   : > { %1723 = vrot.lane.b32.xlu2 %v1717_v2, %s1807_s8 }
 0x7c0   : > { %1146 = vperm.xlu0 %1595, %v1450_v4   ;;  %v1168_v4 = vpop.f32.mrf.mxu2 }
 0x80b   : > { %v1709_v7 = vpop.permute.xlu2 %1708 }
 0x80c   : > { %v1711_v8 = vunpack.i.h.bf16 %v1709_v7  ;;  %v1710_v9 = vunpack.i.l.bf16 %v1709_v7 }
 0x80e   : > { %v1215_v10 = vsel %vm2616_vm13, %v1710_v9, %v1711_v8  ;;  %v1216_v11 = vsel %vm2617_vm3, %v1711_v8, %v1710_v9  ;;  %vm2621_vm13 = vcmp.lt.s32.totalorder %v1890_v23, 1  ;;  %v1473_v23 = vld [vmem:[%s2520_s1 + $0x40] sm:$0xf] }
 0x80f   : > { %v1217_v14 = vsel %vm2618_vm8, %v1215_v10, 0.0  ;;  %v1218_v15 = vsel %vm2619_vm9, %v1216_v11, 0.0  ;;  %vm2622_vm3 = vmmov %vm2621_vm13  ;;  %vm2623_vm8 = vcmp.ge.s32.totalorder %v1899_v29, 0 }
 0x810   : > { %v1227_v16 = vpack.c.bf16 %v1217_v14, %v1217_v14  ;;  %v1228_v47 = vpack.c.bf16 %v1218_v15, %v1218_v15  ;;  %vm1469_vm9 = vmpackc.low %vm217_vm4, %vm2623_vm8 }
 0x812   : > { %v1239_v19 = vsel %vm433_vm12, %v1227_v16, 0  ;;  %v1242_v54 = vsel %vm433_vm12, %v1228_v47, 0 }
 0x813   : > { %1249 = vmatpush.bf16.msrb.mxu0 %v1239_v19  ;;  %1262 = vmatpush.bf16.msrb.mxu1 %v1242_v54  ;;  %v1724_v48 = vpop.permute.xlu2 %1723 }
 0x814   : > { %v1726_v32 = vunpack.i.h.bf16 %v1724_v48  ;;  %v1725_v33 = vunpack.i.l.bf16 %v1724_v48 }
 0x816   : > { %v1199_v24 = vsel %vm2621_vm13, %v1725_v33, %v1726_v32  ;;  %v1200_v27 = vsel %vm2622_vm3, %v1726_v32, %v1725_v33 }
 0x822   : > { %v1719_v55 = vpop.permute.xlu1 %1718  ;;  %v1714_v58 = vpop.permute.xlu0 %1713 }
 0x823   : > { %v1721_v56 = vunpack.i.h.bf16 %v1719_v55  ;;  %v1720_v5 = vunpack.i.l.bf16 %v1719_v55  ;;  %v1716_v57 = vunpack.i.h.bf16 %v1714_v58  ;;  %v1715_v6 = vunpack.i.l.bf16 %v1714_v58 }
 0x825   : > { %v1207_v21 = vsel %vm318_vm7, %v1715_v6, %v1716_v57  ;;  %v1208_v17 = vsel %vm318_vm7, %v1716_v57, %v1715_v6  ;;  %v1191_v22 = vsel %vm282_vm0, %v1720_v5, %v1721_v56  ;;  %v1192_v35 = vsel %vm282_vm0, %v1721_v56, %v1720_v5 }
 0x826   : > { %v1460_v34 = vpack.c.bf16 %v1207_v21, %v1185_v62  ;;  %v1467_v18 = vpack.c.bf16 %v1208_v17, %v1186_v1  ;;  %v1463_v30 = vpack.c.bf16 %v1200_v27, %v1192_v35  ;;  %v1470_v25 = vpack.c.bf16 %v1199_v24, %v1191_v22 }
 0x827   : > { %vm1234_vm0 = vcmask 326656  }
 0x828   : > { %1461 = vmatpush.bf16.msk.msrb.mxu0 %vm1459_vm14, %v1460_v34  ;;  %1468 = vmatpush.bf16.msk.msrb.mxu1 %vm1466_vm1, %v1467_v18  ;;  %vm2624_vm14 = vmmov %vm2622_vm3 }
 0x829   : > { %vm2625_vm1 = vmmov %vm2622_vm3 }
 0x82a   : > { %v1232_v26 = vpop.permute.xlu0 %1231 }
 0x82c   : > { %1464 = vmatpush.bf16.msk.msrb.mxu0 %vm1462_vm15, %v1463_v30  ;;  %1471 = vmatpush.bf16.msk.msrb.mxu1 %vm1469_vm9, %v1470_v25 }
 0x82f   : > { %1465 = vmatmul.msk.bf16.vlgmr.msrb.gmra.mxu0 %vm1234_vm0, %v1457_v28  ;;  %1472 = vmatmul.msk.bf16.vlgmr.msrb.gmra.mxu1 %vm1234_vm0, %v1457_v28 }
 0x832   : > { %v1147_v13 = vpop.permute.xlu0 %1146 }
 0x833   : > { %v1169_v10 = vadd.f32 %v1168_v4, %v1147_v13  ;;  %v1183_v11 = vadd.f32 %v1182_v12, %v1147_v13 }
 0x8ac   : > { %v1253_v31 = vpop.f32.mrf.mxu0  ;;  %v1266_v20 = vpop.f32.mrf.mxu1 }
 0x8ad   : > { %v1254_v59 = vadd.f32 %v1253_v31, %v1232_v26  ;;  %v1267_v36 = vadd.f32 %v1266_v20, %v1232_v26 }
 0x8af   : > { %v1270_v29 = vmax.f32 %v1254_v59, 0.0  ;;  %v1271_v37 = vmax.f32 %v1267_v36, 0.0 }
 0x8b1   : > { %v1732_v38 = vpack.i.bf16 %v1271_v37, %v1270_v29 }
 0x8b3   : > { %1733 = vrot.lane.b32.xlu2 %v1732_v38, %s1807_s8  ;;  %1728 = vrot.lane.b32.xlu1 %v1732_v38, %s1803_s4 }
 0x8b4   : > { %v1255_v39 = vpop.f32.mrf.mxu0  ;;  %v1268_v40 = vpop.f32.mrf.mxu1 }
 0x8bb   : > { %1298 = vperm.xlu1 %1574, %v1474_v41  }
 0x90d   : > { %v1734_v45 = vpop.permute.xlu2 %1733 }
 0x90e   : > { %v1736_v44 = vunpack.i.h.bf16 %v1734_v45  ;;  %v1735_v49 = vunpack.i.l.bf16 %v1734_v45 }
 0x910   : > { %v1276_v62 = vsel %vm2624_vm14, %v1735_v49, %v1736_v44  ;;  %v1277_v1 = vsel %vm2625_vm1, %v1736_v44, %v1735_v49 }
 0x911   : > { %v1476_v63 = vpack.c.bf16 %v1270_v29, %v1277_v1  ;;  %v1480_v0 = vpack.c.bf16 %v1271_v37, %v1276_v62 }
 0x925   : > { %v1729_v42 = vpop.permute.xlu1 %1728 }
 0x926   : > { %v1731_v46 = vunpack.i.h.bf16 %v1729_v42  ;;  %v1730_v43 = vunpack.i.l.bf16 %v1729_v42 }
 0x928   : > { %v1284_v50 = vsel %vm318_vm7, %v1730_v43, %v1731_v46  ;;  %v1285_v51 = vsel %vm318_vm7, %v1731_v46, %v1730_v43  ;;  %vm2626_vm7 = vcmask 195584  }
 0x929   : > { %v1286_v52 = vsel %vm226_vm6, %v1284_v50, 0.0  ;;  %v1287_v53 = vsel %vm227_vm5, %v1285_v51, 0.0  ;;  %vm1475_vm5 = vmpackc.low %vm1809_vm11, %vm216_vm10 }
 0x92a   : > { %v1294_v60 = vpack.c.bf16 %v1286_v52, %v1286_v52  ;;  %v1295_v61 = vpack.c.bf16 %v1287_v53, %v1287_v53  ;;  %vm1479_vm6 = vmpackc.low %vm1809_vm11, %vm217_vm4 }
 0x92c   : > { %v1305_v2 = vsel %vm433_vm12, %v1294_v60, 0  ;;  %v1308_v3 = vsel %vm433_vm12, %v1295_v61, 0  ;;  %vm2627_vm12 = vmmov %vm2626_vm7 }
 0x92d   : > { %1316 = vmatpush.bf16.msra.mxu2 %v1305_v2  ;;  %1329 = vmatpush.bf16.msra.mxu3 %v1308_v3  ;;  %v1299_v7 = vpop.permute.xlu1 %1298 }
 0x931   : > { %1477 = vmatpush.bf16.msk.msra.mxu2 %vm1475_vm5, %v1476_v63  ;;  %1481 = vmatpush.bf16.msk.msra.mxu3 %vm1479_vm6, %v1480_v0 }
 0x934   : > { %1478 = vmatmul.msk.bf16.vlgmr.msra.gmra.mxu2 %vm2626_vm7, %v1473_v23  ;;  %1482 = vmatmul.msk.bf16.vlgmr.msra.gmra.mxu3 %vm2627_vm12, %v1473_v23 }
 0x9b7   : > { %v1319_v8 = vpop.f32.mrf.mxu2  ;;  %v1332_v9 = vpop.f32.mrf.mxu3 }
 0x9b8   : > { %v1320_v14 = vadd.f32 %v1319_v8, %v1299_v7  ;;  %v1333_v15 = vadd.f32 %v1332_v9, %v1299_v7 }
 0x9ba   : > { %v1336_v16 = vadd.f32 %v1320_v14, %v1169_v10  ;;  %v1337_v47 = vadd.f32 %v1333_v15, %v1183_v11 }
 0x9bc   : > { %v1338_v19 = vmax.f32 %v1336_v16, 0.0  ;;  %v1339_v54 = vmax.f32 %v1337_v47, 0.0 }
 0x9be   : > { %1340 = vst [vmem:[%s163_s5] sm:$0xff] %v1338_v19 }
 0x9bf   : > { %1341 = vst [vmem:[%s163_s5 + $0x8] sm:$0xff] %v1339_v54  ;;  %v1321_v48 = vpop.f32.mrf.mxu2  ;;  %v1334_v55 = vpop.f32.mrf.mxu3 }
 0x9c0   : > { %1764 = shalt.err (!%p1761_p3)
}
 0x9c1   : > { %1491 = dma.vmem_to_hbm [thread:$0]  (%p1868_p5), %s1357_s6, 256, %s1359_s7, %s1343_s16  }
 0x9c2 PF: > { %p1497_p4 = scmp.ge.s32.totalorder %s1799_s15, 2  ;;  %s1370_s4 = sand.u32 1, %s1787_s12  }
 0x9c3   : > { %s1371_s8 = scalar_lea.sflag [#allocation3], %s1370_s4 }
 0x9c4   : > { %p1494_p7 = pnand %p1497_p4, %p1872_p6 }
 0x9c6   : > { %p1495_p8 = pneg %p1494_p7 }
 0x9c8   : > { %1782 = dma.done.wait (%p1495_p8), %s1371_s8, 256  }
 0x9c9   : > { %1784 = vsyncadd (%p1495_p8), %s1371_s8, 4294967040  ;;  %p13_p9 = scmp.ge.s32.totalorder %s1855_s18, 4   ;;  %s2628_s12 = smov %s1791_s13 }
 0x9ca   : > { %s2629_s13 = smov %s1795_s14  ;;  %s2630_s14 = smov %s1866_s21 }
 0x9cb   : > { %s2631_s15 = smov %s1855_s18  ;;  %15 = sbr.rel (!%p13_p9) target bundleno = 3 (0x3), region = 83 }
 0x9d0   :  { %1377 = vsyncpa [#allocation3], 1 }
 0x9d1   :  { %1379 = vsyncpa [#allocation3 + $0x1], 1 }

</bundles_post_ra>
